<compile_context>
chip_gen: v7x
topology: tpu7x:2x2x1
jax: 0.10.0
libtpu: 0.0.40
codegen_flags: <defaults>
</compile_context>

<pallas_src>
import functools

import jax
import jax.numpy as jnp
from jax.experimental import pallas as pl
from jax.experimental.pallas import tpu as pltpu


def _round_up(v, m):
    return ((v + m - 1) // m) * m


# ----------------------------------------------------------------------------
# Kernel
# ----------------------------------------------------------------------------
def _grunet_kernel(x2d_ref, h_ref,
                   w_ih0_ref, b_gi0_ref,
                   w_hh_ref, b_gh_ref,
                   w_ih1_ref, b_gi1_ref,
                   w_fc_ref, b_fc_ref,
                   out_ref, hout_ref,
                   gi0_scr,
                   *, seq_len, b_pad, hidden, gate_w):
    f32 = jnp.float32
    bf16 = jnp.bfloat16
    H = hidden
    G = gate_w                         # dense gate-block width (>= 3*H, 128-aligned)

    # Hoisted layer-0 input projection for ALL timesteps: one MXU matmul,
    # staged into a VMEM scratch so it is not held live in vregs across the
    # unrolled recurrence (perf review: bound live ranges).
    gi0_scr[...] = (
        jnp.dot(x2d_ref[...].astype(bf16), w_ih0_ref[...],
                preferred_element_type=f32)
        + b_gi0_ref[...])                                       # (T*Bp, G)

    # Hoist bias broadcasts out of the recurrence (no CSE inside the loop).
    b_gh = jnp.broadcast_to(b_gh_ref[...], (b_pad, 2 * G))      # b_hn per layer
    b_gi1 = jnp.broadcast_to(b_gi1_ref[...], (b_pad, G))        # combined l1 bias

    def gru_gates(gi, gh, h_old):
        # gi / gh: (Bp, G) dense blocks [r | z | n | pad]; h_old: (Bp, H).
        # gi already carries b_ih (+ b_hh for r/z); gh carries b_hn in its
        # n lanes so it lands inside the r*(...) term (PyTorch semantics).
        s = jax.nn.sigmoid(gi + gh)                 # r at [0,H), z at [H,2H)
        r = s[:, :H]
        z = s[:, H:2 * H]
        n = jnp.tanh(gi[:, 2 * H:3 * H] + r * gh[:, 2 * H:3 * H])
        return (1.0 - z) * n + z * h_old            # (Bp, H)

    hd = h_ref[...]                                  # dense [h0 | h1 | 0...]
    h0 = hd[:, :H]
    h1 = hd[:, H:2 * H]

    def step(t, carry):
        h0, h1 = carry
        off = pl.multiple_of(t * b_pad, b_pad)
        gi0 = gi0_scr[pl.ds(off, b_pad), :]                      # (Bp, G)
        # Fused hidden projection for BOTH layers: dense [h0|h1] (Bp, 2H=64)
        # @ block-diagonal (2H, 2G) -> [gh0 | gh1]; K=64 -> 1 pass on v5e too.
        hh = jnp.concatenate([h0, h1], axis=1).astype(bf16)
        gh = jnp.dot(hh, w_hh_ref[...], preferred_element_type=f32) + b_gh
        h0n = gru_gates(gi0, gh[:, :G], h0)
        gi1 = (jnp.dot(h0n.astype(bf16), w_ih1_ref[...],
                       preferred_element_type=f32) + b_gi1)
        h1n = gru_gates(gi1, gh[:, G:], h1)
        return h0n, h1n

    # Bounded-liveness unrolled recurrence (perf review: fori_loop(unroll=True)).
    h0, h1 = jax.lax.fori_loop(0, seq_len, step, (h0, h1), unroll=True)

    # Dense-packed hidden-state output; full 128-lane (unmasked) store, and the
    # buffer is aliased with the hidden-state input.
    parts = [h0, h1]
    pad_w = hout_ref.shape[1] - 2 * H
    if pad_w:
        parts.append(jnp.zeros((b_pad, pad_w), f32))
    hout_ref[...] = jnp.concatenate(parts, axis=1)

    fc_in = jnp.maximum(h1, 0.0).astype(bf16)        # ReLU before Linear
    out_ref[...] = (jnp.dot(fc_in, w_fc_ref[...], preferred_element_type=f32)
                    + b_fc_ref[...]).astype(out_ref.dtype)       # lane-dense store


# ----------------------------------------------------------------------------
# Weight packing (once, in the wrapper): dense gate packing, combined biases,
# block-diagonal fused hidden weight, bf16 weight storage (f32 biases).
# ----------------------------------------------------------------------------
def _pack_params(p, hidden, gate_w, out_w):
    H, G, Op = hidden, gate_w, out_w
    f32, bf16 = jnp.float32, jnp.bfloat16

    def pad_cols(a, width):              # (K, C) -> (K, width), zero right-pad
        return jnp.zeros((a.shape[0], width), f32).at[:, :a.shape[1]].set(a)

    def gi_bias(b_ih, b_hh):
        # Combined input-path bias: [b_ir+b_hr, b_iz+b_hz, b_in], dense-packed.
        b = jnp.concatenate([b_ih[:, :2 * H] + b_hh[:, :2 * H], b_ih[:, 2 * H:]],
                            axis=1)
        return pad_cols(b, G)

    def gh_bias(b_hh):
        # Hidden-path bias: only b_hn (must sit inside the r*(...) term).
        return jnp.zeros((1, G), f32).at[:, 2 * H:3 * H].set(b_hh[:, 2 * H:])

    w_ih0 = pad_cols(p["w_ih0_t"], G).astype(bf16)               # (I, G)
    b_gi0 = gi_bias(p["b_ih0"], p["b_hh0"])                      # (1, G)

    # Block-diagonal fused hidden weight: rows [0,H) -> layer-0 gate block,
    # rows [H,2H) -> layer-1 gate block.  K = 2H, N = 2G.
    w_hh = jnp.zeros((2 * H, 2 * G), f32)
    w_hh = w_hh.at[:H, :3 * H].set(p["w_hh0_t"])
    w_hh = w_hh.at[H:, G:G + 3 * H].set(p["w_hh1_t"])
    w_hh = w_hh.astype(bf16)                                     # (2H, 2G)
    b_gh = jnp.concatenate([gh_bias(p["b_hh0"]), gh_bias(p["b_hh1"])], axis=1)

    w_ih1 = pad_cols(p["w_ih1_t"], G).astype(bf16)               # (H, G)
    b_gi1 = gi_bias(p["b_ih1"], p["b_hh1"])                      # (1, G)

    w_fc = pad_cols(p["w_fc_t"], Op).astype(bf16)                # (H, Op)
    b_fc = pad_cols(p["b_fc"], Op)                               # (1, Op)

    return dict(w_ih0=w_ih0, b_gi0=b_gi0, w_hh=w_hh, b_gh=b_gh,
                w_ih1=w_ih1, b_gi1=b_gi1, w_fc=w_fc, b_fc=b_fc)


# ----------------------------------------------------------------------------
# Wrapper
# ----------------------------------------------------------------------------
def grunet_forward(x, h, params):
    """x: (T, B, I) f32, h: (2, B, H) f32 -> (out (B, O), h_new (2, B, H))."""
    T, B, I = x.shape
    L, _, H = h.shape
    assert L == 2, "kernel is specialized for n_layers=2"
    O = params["b_fc"].shape[-1]

    Bp = _round_up(max(B, 8), 8)                  # sublane alignment
    G = _round_up(3 * H, 128)                     # dense gate block per layer
    HD = _round_up(max(2 * H, 128), 128)          # dense [h0|h1] hidden block
    Op = _round_up(O, 128)                        # lane-dense FC output

    packed = _pack_params(params, H, G, Op)

    # Zero-pad batch rows; padded rows never leak (sliced off on return).
    x_p = jnp.zeros((T, Bp, I), jnp.float32).at[:, :B, :].set(x)
    x2d = x_p.reshape(T * Bp, I)
    h_dense = (jnp.zeros((Bp, HD), jnp.float32)
               .at[:B, :H].set(h[0])
               .at[:B, H:2 * H].set(h[1]))

    kernel = functools.partial(_grunet_kernel, seq_len=T, b_pad=Bp,
                               hidden=H, gate_w=G)
    full = lambda shape: pl.BlockSpec(shape, lambda *_: (0,) * len(shape))

    out_p, hd_new = pl.pallas_call(
        kernel,
        out_shape=(
            jax.ShapeDtypeStruct((Bp, Op), jnp.float32),
            jax.ShapeDtypeStruct((Bp, HD), jnp.float32),
        ),
        grid_spec=pltpu.PrefetchScalarGridSpec(
            num_scalar_prefetch=0,
            grid=(1,),                            # whole (tiny) sequence resident
            in_specs=[
                full((T * Bp, I)),                # x, all timesteps, flattened
                full((Bp, HD)),                   # dense initial hidden [h0|h1]
                full((I, G)), full((1, G)),       # layer0 W_ih (bf16), comb. bias
                full((2 * H, 2 * G)), full((1, 2 * G)),  # fused W_hh (bf16), b_hn's
                full((H, G)), full((1, G)),       # layer1 W_ih (bf16), comb. bias
                full((H, Op)), full((1, Op)),     # fc W^T (bf16), bias
            ],
            out_specs=[full((Bp, Op)), full((Bp, HD))],
            scratch_shapes=[pltpu.VMEM((T * Bp, G), jnp.float32)],
        ),
        input_output_aliases={1: 1},              # hidden in -> hidden out
        compiler_params=pltpu.CompilerParams(
            dimension_semantics=("arbitrary",),
        ),
    )(x2d, h_dense,
      packed["w_ih0"], packed["b_gi0"],
      packed["w_hh"], packed["b_gh"],
      packed["w_ih1"], packed["b_gi1"],
      packed["w_fc"], packed["b_fc"])

    out = out_p[:B, :O]
    h_new = jnp.stack([hd_new[:B, :H], hd_new[:B, H:2 * H]])
    return out, h_new


# ----------------------------------------------------------------------------
# Params + pure-JAX reference (PyTorch GRU semantics, eval mode)
# ----------------------------------------------------------------------------
def init_params(key, num_inputs, num_outputs, hidden):
    """Deterministic init mimicking nn.GRU / nn.Linear (uniform +-1/sqrt(H))."""
    k = 1.0 / jnp.sqrt(jnp.float32(hidden))
    keys = jax.random.split(key, 12)
    u = lambda kk, shape: jax.random.uniform(kk, shape, jnp.float32, -k, k)
    return {
        "w_ih0_t": u(keys[0], (num_inputs, 3 * hidden)),
        "w_hh0_t": u(keys[1], (hidden, 3 * hidden)),
        "b_ih0":   u(keys[2], (1, 3 * hidden)),
        "b_hh0":   u(keys[3], (1, 3 * hidden)),
        "w_ih1_t": u(keys[4], (hidden, 3 * hidden)),
        "w_hh1_t": u(keys[5], (hidden, 3 * hidden)),
        "b_ih1":   u(keys[6], (1, 3 * hidden)),
        "b_hh1":   u(keys[7], (1, 3 * hidden)),
        "w_fc_t":  u(keys[8], (hidden, num_outputs)),
        "b_fc":    u(keys[9], (1, num_outputs)),
    }


def _gru_cell(x, h, wih_t, whh_t, bih, bhh, hidden):
    gi = jnp.dot(x, wih_t, preferred_element_type=jnp.float32) + bih
    gh = jnp.dot(h, whh_t, preferred_element_type=jnp.float32) + bhh
    i_r, i_z, i_n = gi[:, :hidden], gi[:, hidden:2 * hidden], gi[:, 2 * hidden:]
    h_r, h_z, h_n = gh[:, :hidden], gh[:, hidden:2 * hidden], gh[:, 2 * hidden:]
    r = jax.nn.sigmoid(i_r + h_r)
    z = jax.nn.sigmoid(i_z + h_z)
    n = jnp.tanh(i_n + r * h_n)
    return (1.0 - z) * n + z * h


def grunet_reference(x, h, p):
    """Pure-JAX reference for the same semantics (eval mode, no dropout)."""
    H = h.shape[-1]
    h0, h1 = h[0], h[1]
    for t in range(x.shape[0]):
        h0 = _gru_cell(x[t], h0, p["w_ih0_t"], p["w_hh0_t"], p["b_ih0"], p["b_hh0"], H)
        h1 = _gru_cell(h0, h1, p["w_ih1_t"], p["w_hh1_t"], p["b_ih1"], p["b_hh1"], H)
    out = jnp.maximum(h1, 0.0) @ p["w_fc_t"] + p["b_fc"]
    return out, jnp.stack([h0, h1])


if __name__ == "__main__":
    num_inputs, num_outputs, hidden, n_layers = 16, 4, 32, 2
    seq_len, batch = 8, 4

    key = jax.random.PRNGKey(0)
    kx, kh, kp = jax.random.split(key, 3)

    x = jax.random.normal(kx, (seq_len, batch, num_inputs), jnp.float32)
    h = jax.random.normal(kh, (n_layers, batch, hidden), jnp.float32)
    params = init_params(kp, num_inputs, num_outputs, hidden)
    # The kernel stores weights in bf16 (perf review).  Round the example
    # weights to bf16-representable values so that storage is lossless and the
    # tolerance below only has to absorb activation rounding in the dots.
    params = jax.tree_util.tree_map(
        lambda a: a.astype(jnp.bfloat16).astype(jnp.float32), params)

    fwd = jax.jit(grunet_forward)
    out, h_new = fwd(x, h, params)
    out = jax.block_until_ready(out)
    h_new = jax.block_until_ready(h_new)

    out_expected, h_expected = grunet_reference(x, h, params)
    assert jnp.allclose(out, out_expected, atol=2e-2, rtol=2e-2), "output mismatch"
    assert jnp.allclose(h_new, h_expected, atol=2e-2, rtol=2e-2), "hidden mismatch"

    print("KERNEL_OK")
</pallas_src>

<mosaic_0001>
module attributes {stable_mosaic.version = 11 : i64} {
  func.func @_grunet_kernel(%arg0: i32, %arg1: memref<64x16xf32, #tpu.memory_space<vmem>>, %arg2: memref<8x128xf32, #tpu.memory_space<vmem>>, %arg3: memref<16x128xbf16, #tpu.memory_space<vmem>>, %arg4: memref<1x128xf32, #tpu.memory_space<vmem>>, %arg5: memref<64x256xbf16, #tpu.memory_space<vmem>>, %arg6: memref<1x256xf32, #tpu.memory_space<vmem>>, %arg7: memref<32x128xbf16, #tpu.memory_space<vmem>>, %arg8: memref<1x128xf32, #tpu.memory_space<vmem>>, %arg9: memref<32x128xbf16, #tpu.memory_space<vmem>>, %arg10: memref<1x128xf32, #tpu.memory_space<vmem>>, %arg11: memref<8x128xf32, #tpu.memory_space<vmem>>, %arg12: memref<8x128xf32, #tpu.memory_space<vmem>>, %arg13: memref<64x128xf32, #tpu.memory_space<vmem>>) attributes {dimension_semantics = [#tpu.dimension_semantics<arbitrary>], iteration_bounds = array<i64: 1>, scalar_prefetch = 0 : i64, scratch_operands = 1 : i64, tpu.core_type = #tpu.core_type<tc>, window_params = [{pipeline_mode = #tpu.pipeline_mode<synchronous>, transform_indices = @transform_0, window_bounds = array<i64: 64, 16>}, {pipeline_mode = #tpu.pipeline_mode<synchronous>, transform_indices = @transform_1, window_bounds = array<i64: 8, 128>}, {pipeline_mode = #tpu.pipeline_mode<synchronous>, transform_indices = @transform_2, window_bounds = array<i64: 16, 128>}, {pipeline_mode = #tpu.pipeline_mode<synchronous>, transform_indices = @transform_3, window_bounds = array<i64: 1, 128>}, {pipeline_mode = #tpu.pipeline_mode<synchronous>, transform_indices = @transform_4, window_bounds = array<i64: 64, 256>}, {pipeline_mode = #tpu.pipeline_mode<synchronous>, transform_indices = @transform_5, window_bounds = array<i64: 1, 256>}, {pipeline_mode = #tpu.pipeline_mode<synchronous>, transform_indices = @transform_6, window_bounds = array<i64: 32, 128>}, {pipeline_mode = #tpu.pipeline_mode<synchronous>, transform_indices = @transform_7, window_bounds = array<i64: 1, 128>}, {pipeline_mode = #tpu.pipeline_mode<synchronous>, transform_indices = @transform_8, window_bounds = array<i64: 32, 128>}, {pipeline_mode = #tpu.pipeline_mode<synchronous>, transform_indices = @transform_9, window_bounds = array<i64: 1, 128>}, {pipeline_mode = #tpu.pipeline_mode<synchronous>, transform_indices = @transform_10, window_bounds = array<i64: 8, 128>}, {pipeline_mode = #tpu.pipeline_mode<synchronous>, transform_indices = @transform_11, window_bounds = array<i64: 8, 128>}]} {
    %c0 = arith.constant 0 : index
    %c0_0 = arith.constant 0 : index
    %0 = vector.load %arg1[%c0, %c0_0] : memref<64x16xf32, #tpu.memory_space<vmem>>, vector<64x16xf32>
    %1 = arith.truncf %0 : vector<64x16xf32> to vector<64x16xbf16>
    %c0_1 = arith.constant 0 : index
    %c0_2 = arith.constant 0 : index
    %2 = vector.load %arg3[%c0_1, %c0_2] : memref<16x128xbf16, #tpu.memory_space<vmem>>, vector<16x128xbf16>
    %cst = arith.constant dense<0.000000e+00> : vector<64x128xf32>
    %3 = tpu.matmul %1, %2, %cst {dimension_numbers = #tpu.dot_dimension_numbers<[1], [0], [0], [1], [0, 0, 1, 1], [], []>} : vector<64x16xbf16>, vector<16x128xbf16>, vector<64x128xf32> -> vector<64x128xf32>
    %c0_3 = arith.constant 0 : index
    %c0_4 = arith.constant 0 : index
    %4 = vector.load %arg4[%c0_3, %c0_4] : memref<1x128xf32, #tpu.memory_space<vmem>>, vector<1x128xf32>
    %5 = vector.broadcast %4 : vector<1x128xf32> to vector<64x128xf32>
    %6 = arith.addf %3, %5 : vector<64x128xf32>
    %c0_5 = arith.constant 0 : index
    %c0_6 = arith.constant 0 : index
    %7 = vector.load %arg13[%c0_5, %c0_6] : memref<64x128xf32, #tpu.memory_space<vmem>>, vector<64x128xf32>
    tpu.vector_store %arg13[%c0_5, %c0_6], %6 {strides = array<i32>} : memref<64x128xf32, #tpu.memory_space<vmem>>, vector<64x128xf32>,
    %c0_7 = arith.constant 0 : index
    %c0_8 = arith.constant 0 : index
    %8 = vector.load %arg6[%c0_7, %c0_8] : memref<1x256xf32, #tpu.memory_space<vmem>>, vector<1x256xf32>
    %9 = vector.shape_cast %8 : vector<1x256xf32> to vector<1x256xf32>
    %10 = vector.broadcast %9 : vector<1x256xf32> to vector<8x256xf32>
    %c0_9 = arith.constant 0 : index
    %c0_10 = arith.constant 0 : index
    %11 = vector.load %arg8[%c0_9, %c0_10] : memref<1x128xf32, #tpu.memory_space<vmem>>, vector<1x128xf32>
    %12 = vector.shape_cast %11 : vector<1x128xf32> to vector<1x128xf32>
    %13 = vector.broadcast %12 : vector<1x128xf32> to vector<8x128xf32>
    %c0_11 = arith.constant 0 : index
    %c0_12 = arith.constant 0 : index
    %14 = vector.load %arg2[%c0_11, %c0_12] : memref<8x128xf32, #tpu.memory_space<vmem>>, vector<8x128xf32>
    %15 = vector.extract_strided_slice %14 {offsets = [0, 0], sizes = [8, 32], strides = [1, 1]} : vector<8x128xf32> to vector<8x32xf32>
    %16 = vector.extract_strided_slice %14 {offsets = [0, 32], sizes = [8, 32], strides = [1, 1]} : vector<8x128xf32> to vector<8x32xf32>
    %c0_i32 = arith.constant 0 : i32
    %c8_i32 = arith.constant 8 : i32
    %17 = arith.muli %c0_i32, %c8_i32 : i32
    %18 = tpu.assume_multiple %17, 8 : i32
    %19 = arith.index_cast %18 : i32 to index
    %c0_13 = arith.constant 0 : index
    %20 = vector.load %arg13[%19, %c0_13] : memref<64x128xf32, #tpu.memory_space<vmem>>, vector<8x128xf32>
    %21 = tpu.concatenate %15, %16 in 1 : vector<8x32xf32>, vector<8x32xf32> -> vector<8x64xf32>
    %22 = arith.truncf %21 : vector<8x64xf32> to vector<8x64xbf16>
    %c0_14 = arith.constant 0 : index
    %c0_15 = arith.constant 0 : index
    %23 = vector.load %arg5[%c0_14, %c0_15] : memref<64x256xbf16, #tpu.memory_space<vmem>>, vector<64x256xbf16>
    %cst_16 = arith.constant dense<0.000000e+00> : vector<8x256xf32>
    %24 = tpu.matmul %22, %23, %cst_16 {dimension_numbers = #tpu.dot_dimension_numbers<[1], [0], [0], [1], [0, 0, 1, 1], [], []>} : vector<8x64xbf16>, vector<64x256xbf16>, vector<8x256xf32> -> vector<8x256xf32>
    %25 = arith.addf %24, %10 : vector<8x256xf32>
    %26 = vector.extract_strided_slice %25 {offsets = [0, 0], sizes = [8, 128], strides = [1, 1]} : vector<8x256xf32> to vector<8x128xf32>
    %27 = arith.addf %20, %26 : vector<8x128xf32>
    %28 = arith.negf %27 : vector<8x128xf32>
    %29 = math.exp %28 : vector<8x128xf32>
    %cst_17 = arith.constant 1.000000e+00 : f32
    %30 = vector.broadcast %cst_17 : f32 to vector<8x128xf32>
    %31 = arith.addf %30, %29 : vector<8x128xf32>
    %32 = arith.divf %30, %31 : vector<8x128xf32>
    %33 = vector.extract_strided_slice %32 {offsets = [0, 0], sizes = [8, 32], strides = [1, 1]} : vector<8x128xf32> to vector<8x32xf32>
    %34 = vector.extract_strided_slice %32 {offsets = [0, 32], sizes = [8, 32], strides = [1, 1]} : vector<8x128xf32> to vector<8x32xf32>
    %35 = vector.extract_strided_slice %20 {offsets = [0, 64], sizes = [8, 32], strides = [1, 1]} : vector<8x128xf32> to vector<8x32xf32>
    %36 = vector.extract_strided_slice %26 {offsets = [0, 64], sizes = [8, 32], strides = [1, 1]} : vector<8x128xf32> to vector<8x32xf32>
    %37 = arith.mulf %33, %36 : vector<8x32xf32>
    %38 = arith.addf %35, %37 : vector<8x32xf32>
    %39 = math.tanh %38 : vector<8x32xf32>
    %cst_18 = arith.constant 1.000000e+00 : f32
    %40 = vector.broadcast %cst_18 : f32 to vector<8x32xf32>
    %41 = arith.subf %40, %34 : vector<8x32xf32>
    %42 = arith.mulf %41, %39 : vector<8x32xf32>
    %43 = arith.mulf %34, %15 : vector<8x32xf32>
    %44 = arith.addf %42, %43 : vector<8x32xf32>
    %45 = arith.truncf %44 : vector<8x32xf32> to vector<8x32xbf16>
    %c0_19 = arith.constant 0 : index
    %c0_20 = arith.constant 0 : index
    %46 = vector.load %arg7[%c0_19, %c0_20] : memref<32x128xbf16, #tpu.memory_space<vmem>>, vector<32x128xbf16>
    %cst_21 = arith.constant dense<0.000000e+00> : vector<8x128xf32>
    %47 = tpu.matmul %45, %46, %cst_21 {dimension_numbers = #tpu.dot_dimension_numbers<[1], [0], [0], [1], [0, 0, 1, 1], [], []>} : vector<8x32xbf16>, vector<32x128xbf16>, vector<8x128xf32> -> vector<8x128xf32>
    %48 = arith.addf %47, %13 : vector<8x128xf32>
    %49 = vector.extract_strided_slice %25 {offsets = [0, 128], sizes = [8, 128], strides = [1, 1]} : vector<8x256xf32> to vector<8x128xf32>
    %50 = arith.addf %48, %49 : vector<8x128xf32>
    %51 = arith.negf %50 : vector<8x128xf32>
    %52 = math.exp %51 : vector<8x128xf32>
    %cst_22 = arith.constant 1.000000e+00 : f32
    %53 = vector.broadcast %cst_22 : f32 to vector<8x128xf32>
    %54 = arith.addf %53, %52 : vector<8x128xf32>
    %55 = arith.divf %53, %54 : vector<8x128xf32>
    %56 = vector.extract_strided_slice %55 {offsets = [0, 0], sizes = [8, 32], strides = [1, 1]} : vector<8x128xf32> to vector<8x32xf32>
    %57 = vector.extract_strided_slice %55 {offsets = [0, 32], sizes = [8, 32], strides = [1, 1]} : vector<8x128xf32> to vector<8x32xf32>
    %58 = vector.extract_strided_slice %48 {offsets = [0, 64], sizes = [8, 32], strides = [1, 1]} : vector<8x128xf32> to vector<8x32xf32>
    %59 = vector.extract_strided_slice %49 {offsets = [0, 64], sizes = [8, 32], strides = [1, 1]} : vector<8x128xf32> to vector<8x32xf32>
    %60 = arith.mulf %56, %59 : vector<8x32xf32>
    %61 = arith.addf %58, %60 : vector<8x32xf32>
    %62 = math.tanh %61 : vector<8x32xf32>
    %cst_23 = arith.constant 1.000000e+00 : f32
    %63 = vector.broadcast %cst_23 : f32 to vector<8x32xf32>
    %64 = arith.subf %63, %57 : vector<8x32xf32>
    %65 = arith.mulf %64, %62 : vector<8x32xf32>
    %66 = arith.mulf %57, %16 : vector<8x32xf32>
    %67 = arith.addf %65, %66 : vector<8x32xf32>
    %c1_i32 = arith.constant 1 : i32
    %c8_i32_24 = arith.constant 8 : i32
    %68 = arith.muli %c1_i32, %c8_i32_24 : i32
    %69 = tpu.assume_multiple %68, 8 : i32
    %70 = arith.index_cast %69 : i32 to index
    %c0_25 = arith.constant 0 : index
    %71 = vector.load %arg13[%70, %c0_25] : memref<64x128xf32, #tpu.memory_space<vmem>>, vector<8x128xf32>
    %72 = tpu.concatenate %44, %67 in 1 : vector<8x32xf32>, vector<8x32xf32> -> vector<8x64xf32>
    %73 = arith.truncf %72 : vector<8x64xf32> to vector<8x64xbf16>
    %c0_26 = arith.constant 0 : index
    %c0_27 = arith.constant 0 : index
    %74 = vector.load %arg5[%c0_26, %c0_27] : memref<64x256xbf16, #tpu.memory_space<vmem>>, vector<64x256xbf16>
    %cst_28 = arith.constant dense<0.000000e+00> : vector<8x256xf32>
    %75 = tpu.matmul %73, %74, %cst_28 {dimension_numbers = #tpu.dot_dimension_numbers<[1], [0], [0], [1], [0, 0, 1, 1], [], []>} : vector<8x64xbf16>, vector<64x256xbf16>, vector<8x256xf32> -> vector<8x256xf32>
    %76 = arith.addf %75, %10 : vector<8x256xf32>
    %77 = vector.extract_strided_slice %76 {offsets = [0, 0], sizes = [8, 128], strides = [1, 1]} : vector<8x256xf32> to vector<8x128xf32>
    %78 = arith.addf %71, %77 : vector<8x128xf32>
    %79 = arith.negf %78 : vector<8x128xf32>
    %80 = math.exp %79 : vector<8x128xf32>
    %cst_29 = arith.constant 1.000000e+00 : f32
    %81 = vector.broadcast %cst_29 : f32 to vector<8x128xf32>
    %82 = arith.addf %81, %80 : vector<8x128xf32>
    %83 = arith.divf %81, %82 : vector<8x128xf32>
    %84 = vector.extract_strided_slice %83 {offsets = [0, 0], sizes = [8, 32], strides = [1, 1]} : vector<8x128xf32> to vector<8x32xf32>
    %85 = vector.extract_strided_slice %83 {offsets = [0, 32], sizes = [8, 32], strides = [1, 1]} : vector<8x128xf32> to vector<8x32xf32>
    %86 = vector.extract_strided_slice %71 {offsets = [0, 64], sizes = [8, 32], strides = [1, 1]} : vector<8x128xf32> to vector<8x32xf32>
    %87 = vector.extract_strided_slice %77 {offsets = [0, 64], sizes = [8, 32], strides = [1, 1]} : vector<8x128xf32> to vector<8x32xf32>
    %88 = arith.mulf %84, %87 : vector<8x32xf32>
    %89 = arith.addf %86, %88 : vector<8x32xf32>
    %90 = math.tanh %89 : vector<8x32xf32>
    %cst_30 = arith.constant 1.000000e+00 : f32
    %91 = vector.broadcast %cst_30 : f32 to vector<8x32xf32>
    %92 = arith.subf %91, %85 : vector<8x32xf32>
    %93 = arith.mulf %92, %90 : vector<8x32xf32>
    %94 = arith.mulf %85, %44 : vector<8x32xf32>
    %95 = arith.addf %93, %94 : vector<8x32xf32>
    %96 = arith.truncf %95 : vector<8x32xf32> to vector<8x32xbf16>
    %c0_31 = arith.constant 0 : index
    %c0_32 = arith.constant 0 : index
    %97 = vector.load %arg7[%c0_31, %c0_32] : memref<32x128xbf16, #tpu.memory_space<vmem>>, vector<32x128xbf16>
    %cst_33 = arith.constant dense<0.000000e+00> : vector<8x128xf32>
    %98 = tpu.matmul %96, %97, %cst_33 {dimension_numbers = #tpu.dot_dimension_numbers<[1], [0], [0], [1], [0, 0, 1, 1], [], []>} : vector<8x32xbf16>, vector<32x128xbf16>, vector<8x128xf32> -> vector<8x128xf32>
    %99 = arith.addf %98, %13 : vector<8x128xf32>
    %100 = vector.extract_strided_slice %76 {offsets = [0, 128], sizes = [8, 128], strides = [1, 1]} : vector<8x256xf32> to vector<8x128xf32>
    %101 = arith.addf %99, %100 : vector<8x128xf32>
    %102 = arith.negf %101 : vector<8x128xf32>
    %103 = math.exp %102 : vector<8x128xf32>
    %cst_34 = arith.constant 1.000000e+00 : f32
    %104 = vector.broadcast %cst_34 : f32 to vector<8x128xf32>
    %105 = arith.addf %104, %103 : vector<8x128xf32>
    %106 = arith.divf %104, %105 : vector<8x128xf32>
    %107 = vector.extract_strided_slice %106 {offsets = [0, 0], sizes = [8, 32], strides = [1, 1]} : vector<8x128xf32> to vector<8x32xf32>
    %108 = vector.extract_strided_slice %106 {offsets = [0, 32], sizes = [8, 32], strides = [1, 1]} : vector<8x128xf32> to vector<8x32xf32>
    %109 = vector.extract_strided_slice %99 {offsets = [0, 64], sizes = [8, 32], strides = [1, 1]} : vector<8x128xf32> to vector<8x32xf32>
    %110 = vector.extract_strided_slice %100 {offsets = [0, 64], sizes = [8, 32], strides = [1, 1]} : vector<8x128xf32> to vector<8x32xf32>
    %111 = arith.mulf %107, %110 : vector<8x32xf32>
    %112 = arith.addf %109, %111 : vector<8x32xf32>
    %113 = math.tanh %112 : vector<8x32xf32>
    %cst_35 = arith.constant 1.000000e+00 : f32
    %114 = vector.broadcast %cst_35 : f32 to vector<8x32xf32>
    %115 = arith.subf %114, %108 : vector<8x32xf32>
    %116 = arith.mulf %115, %113 : vector<8x32xf32>
    %117 = arith.mulf %108, %67 : vector<8x32xf32>
    %118 = arith.addf %116, %117 : vector<8x32xf32>
    %c2_i32 = arith.constant 2 : i32
    %c8_i32_36 = arith.constant 8 : i32
    %119 = arith.muli %c2_i32, %c8_i32_36 : i32
    %120 = tpu.assume_multiple %119, 8 : i32
    %121 = arith.index_cast %120 : i32 to index
    %c0_37 = arith.constant 0 : index
    %122 = vector.load %arg13[%121, %c0_37] : memref<64x128xf32, #tpu.memory_space<vmem>>, vector<8x128xf32>
    %123 = tpu.concatenate %95, %118 in 1 : vector<8x32xf32>, vector<8x32xf32> -> vector<8x64xf32>
    %124 = arith.truncf %123 : vector<8x64xf32> to vector<8x64xbf16>
    %c0_38 = arith.constant 0 : index
    %c0_39 = arith.constant 0 : index
    %125 = vector.load %arg5[%c0_38, %c0_39] : memref<64x256xbf16, #tpu.memory_space<vmem>>, vector<64x256xbf16>
    %cst_40 = arith.constant dense<0.000000e+00> : vector<8x256xf32>
    %126 = tpu.matmul %124, %125, %cst_40 {dimension_numbers = #tpu.dot_dimension_numbers<[1], [0], [0], [1], [0, 0, 1, 1], [], []>} : vector<8x64xbf16>, vector<64x256xbf16>, vector<8x256xf32> -> vector<8x256xf32>
    %127 = arith.addf %126, %10 : vector<8x256xf32>
    %128 = vector.extract_strided_slice %127 {offsets = [0, 0], sizes = [8, 128], strides = [1, 1]} : vector<8x256xf32> to vector<8x128xf32>
    %129 = arith.addf %122, %128 : vector<8x128xf32>
    %130 = arith.negf %129 : vector<8x128xf32>
    %131 = math.exp %130 : vector<8x128xf32>
    %cst_41 = arith.constant 1.000000e+00 : f32
    %132 = vector.broadcast %cst_41 : f32 to vector<8x128xf32>
    %133 = arith.addf %132, %131 : vector<8x128xf32>
    %134 = arith.divf %132, %133 : vector<8x128xf32>
    %135 = vector.extract_strided_slice %134 {offsets = [0, 0], sizes = [8, 32], strides = [1, 1]} : vector<8x128xf32> to vector<8x32xf32>
    %136 = vector.extract_strided_slice %134 {offsets = [0, 32], sizes = [8, 32], strides = [1, 1]} : vector<8x128xf32> to vector<8x32xf32>
    %137 = vector.extract_strided_slice %122 {offsets = [0, 64], sizes = [8, 32], strides = [1, 1]} : vector<8x128xf32> to vector<8x32xf32>
    %138 = vector.extract_strided_slice %128 {offsets = [0, 64], sizes = [8, 32], strides = [1, 1]} : vector<8x128xf32> to vector<8x32xf32>
    %139 = arith.mulf %135, %138 : vector<8x32xf32>
    %140 = arith.addf %137, %139 : vector<8x32xf32>
    %141 = math.tanh %140 : vector<8x32xf32>
    %cst_42 = arith.constant 1.000000e+00 : f32
    %142 = vector.broadcast %cst_42 : f32 to vector<8x32xf32>
    %143 = arith.subf %142, %136 : vector<8x32xf32>
    %144 = arith.mulf %143, %141 : vector<8x32xf32>
    %145 = arith.mulf %136, %95 : vector<8x32xf32>
    %146 = arith.addf %144, %145 : vector<8x32xf32>
    %147 = arith.truncf %146 : vector<8x32xf32> to vector<8x32xbf16>
    %c0_43 = arith.constant 0 : index
    %c0_44 = arith.constant 0 : index
    %148 = vector.load %arg7[%c0_43, %c0_44] : memref<32x128xbf16, #tpu.memory_space<vmem>>, vector<32x128xbf16>
    %cst_45 = arith.constant dense<0.000000e+00> : vector<8x128xf32>
    %149 = tpu.matmul %147, %148, %cst_45 {dimension_numbers = #tpu.dot_dimension_numbers<[1], [0], [0], [1], [0, 0, 1, 1], [], []>} : vector<8x32xbf16>, vector<32x128xbf16>, vector<8x128xf32> -> vector<8x128xf32>
    %150 = arith.addf %149, %13 : vector<8x128xf32>
    %151 = vector.extract_strided_slice %127 {offsets = [0, 128], sizes = [8, 128], strides = [1, 1]} : vector<8x256xf32> to vector<8x128xf32>
    %152 = arith.addf %150, %151 : vector<8x128xf32>
    %153 = arith.negf %152 : vector<8x128xf32>
    %154 = math.exp %153 : vector<8x128xf32>
    %cst_46 = arith.constant 1.000000e+00 : f32
    %155 = vector.broadcast %cst_46 : f32 to vector<8x128xf32>
    %156 = arith.addf %155, %154 : vector<8x128xf32>
    %157 = arith.divf %155, %156 : vector<8x128xf32>
    %158 = vector.extract_strided_slice %157 {offsets = [0, 0], sizes = [8, 32], strides = [1, 1]} : vector<8x128xf32> to vector<8x32xf32>
    %159 = vector.extract_strided_slice %157 {offsets = [0, 32], sizes = [8, 32], strides = [1, 1]} : vector<8x128xf32> to vector<8x32xf32>
    %160 = vector.extract_strided_slice %150 {offsets = [0, 64], sizes = [8, 32], strides = [1, 1]} : vector<8x128xf32> to vector<8x32xf32>
    %161 = vector.extract_strided_slice %151 {offsets = [0, 64], sizes = [8, 32], strides = [1, 1]} : vector<8x128xf32> to vector<8x32xf32>
    %162 = arith.mulf %158, %161 : vector<8x32xf32>
    %163 = arith.addf %160, %162 : vector<8x32xf32>
    %164 = math.tanh %163 : vector<8x32xf32>
    %cst_47 = arith.constant 1.000000e+00 : f32
    %165 = vector.broadcast %cst_47 : f32 to vector<8x32xf32>
    %166 = arith.subf %165, %159 : vector<8x32xf32>
    %167 = arith.mulf %166, %164 : vector<8x32xf32>
    %168 = arith.mulf %159, %118 : vector<8x32xf32>
    %169 = arith.addf %167, %168 : vector<8x32xf32>
    %c3_i32 = arith.constant 3 : i32
    %c8_i32_48 = arith.constant 8 : i32
    %170 = arith.muli %c3_i32, %c8_i32_48 : i32
    %171 = tpu.assume_multiple %170, 8 : i32
    %172 = arith.index_cast %171 : i32 to index
    %c0_49 = arith.constant 0 : index
    %173 = vector.load %arg13[%172, %c0_49] : memref<64x128xf32, #tpu.memory_space<vmem>>, vector<8x128xf32>
    %174 = tpu.concatenate %146, %169 in 1 : vector<8x32xf32>, vector<8x32xf32> -> vector<8x64xf32>
    %175 = arith.truncf %174 : vector<8x64xf32> to vector<8x64xbf16>
    %c0_50 = arith.constant 0 : index
    %c0_51 = arith.constant 0 : index
    %176 = vector.load %arg5[%c0_50, %c0_51] : memref<64x256xbf16, #tpu.memory_space<vmem>>, vector<64x256xbf16>
    %cst_52 = arith.constant dense<0.000000e+00> : vector<8x256xf32>
    %177 = tpu.matmul %175, %176, %cst_52 {dimension_numbers = #tpu.dot_dimension_numbers<[1], [0], [0], [1], [0, 0, 1, 1], [], []>} : vector<8x64xbf16>, vector<64x256xbf16>, vector<8x256xf32> -> vector<8x256xf32>
    %178 = arith.addf %177, %10 : vector<8x256xf32>
    %179 = vector.extract_strided_slice %178 {offsets = [0, 0], sizes = [8, 128], strides = [1, 1]} : vector<8x256xf32> to vector<8x128xf32>
    %180 = arith.addf %173, %179 : vector<8x128xf32>
    %181 = arith.negf %180 : vector<8x128xf32>
    %182 = math.exp %181 : vector<8x128xf32>
    %cst_53 = arith.constant 1.000000e+00 : f32
    %183 = vector.broadcast %cst_53 : f32 to vector<8x128xf32>
    %184 = arith.addf %183, %182 : vector<8x128xf32>
    %185 = arith.divf %183, %184 : vector<8x128xf32>
    %186 = vector.extract_strided_slice %185 {offsets = [0, 0], sizes = [8, 32], strides = [1, 1]} : vector<8x128xf32> to vector<8x32xf32>
    %187 = vector.extract_strided_slice %185 {offsets = [0, 32], sizes = [8, 32], strides = [1, 1]} : vector<8x128xf32> to vector<8x32xf32>
    %188 = vector.extract_strided_slice %173 {offsets = [0, 64], sizes = [8, 32], strides = [1, 1]} : vector<8x128xf32> to vector<8x32xf32>
    %189 = vector.extract_strided_slice %179 {offsets = [0, 64], sizes = [8, 32], strides = [1, 1]} : vector<8x128xf32> to vector<8x32xf32>
    %190 = arith.mulf %186, %189 : vector<8x32xf32>
    %191 = arith.addf %188, %190 : vector<8x32xf32>
    %192 = math.tanh %191 : vector<8x32xf32>
    %cst_54 = arith.constant 1.000000e+00 : f32
    %193 = vector.broadcast %cst_54 : f32 to vector<8x32xf32>
    %194 = arith.subf %193, %187 : vector<8x32xf32>
    %195 = arith.mulf %194, %192 : vector<8x32xf32>
    %196 = arith.mulf %187, %146 : vector<8x32xf32>
    %197 = arith.addf %195, %196 : vector<8x32xf32>
    %198 = arith.truncf %197 : vector<8x32xf32> to vector<8x32xbf16>
    %c0_55 = arith.constant 0 : index
    %c0_56 = arith.constant 0 : index
    %199 = vector.load %arg7[%c0_55, %c0_56] : memref<32x128xbf16, #tpu.memory_space<vmem>>, vector<32x128xbf16>
    %cst_57 = arith.constant dense<0.000000e+00> : vector<8x128xf32>
    %200 = tpu.matmul %198, %199, %cst_57 {dimension_numbers = #tpu.dot_dimension_numbers<[1], [0], [0], [1], [0, 0, 1, 1], [], []>} : vector<8x32xbf16>, vector<32x128xbf16>, vector<8x128xf32> -> vector<8x128xf32>
    %201 = arith.addf %200, %13 : vector<8x128xf32>
    %202 = vector.extract_strided_slice %178 {offsets = [0, 128], sizes = [8, 128], strides = [1, 1]} : vector<8x256xf32> to vector<8x128xf32>
    %203 = arith.addf %201, %202 : vector<8x128xf32>
    %204 = arith.negf %203 : vector<8x128xf32>
    %205 = math.exp %204 : vector<8x128xf32>
    %cst_58 = arith.constant 1.000000e+00 : f32
    %206 = vector.broadcast %cst_58 : f32 to vector<8x128xf32>
    %207 = arith.addf %206, %205 : vector<8x128xf32>
    %208 = arith.divf %206, %207 : vector<8x128xf32>
    %209 = vector.extract_strided_slice %208 {offsets = [0, 0], sizes = [8, 32], strides = [1, 1]} : vector<8x128xf32> to vector<8x32xf32>
    %210 = vector.extract_strided_slice %208 {offsets = [0, 32], sizes = [8, 32], strides = [1, 1]} : vector<8x128xf32> to vector<8x32xf32>
    %211 = vector.extract_strided_slice %201 {offsets = [0, 64], sizes = [8, 32], strides = [1, 1]} : vector<8x128xf32> to vector<8x32xf32>
    %212 = vector.extract_strided_slice %202 {offsets = [0, 64], sizes = [8, 32], strides = [1, 1]} : vector<8x128xf32> to vector<8x32xf32>
    %213 = arith.mulf %209, %212 : vector<8x32xf32>
    %214 = arith.addf %211, %213 : vector<8x32xf32>
    %215 = math.tanh %214 : vector<8x32xf32>
    %cst_59 = arith.constant 1.000000e+00 : f32
    %216 = vector.broadcast %cst_59 : f32 to vector<8x32xf32>
    %217 = arith.subf %216, %210 : vector<8x32xf32>
    %218 = arith.mulf %217, %215 : vector<8x32xf32>
    %219 = arith.mulf %210, %169 : vector<8x32xf32>
    %220 = arith.addf %218, %219 : vector<8x32xf32>
    %c4_i32 = arith.constant 4 : i32
    %c8_i32_60 = arith.constant 8 : i32
    %221 = arith.muli %c4_i32, %c8_i32_60 : i32
    %222 = tpu.assume_multiple %221, 8 : i32
    %223 = arith.index_cast %222 : i32 to index
    %c0_61 = arith.constant 0 : index
    %224 = vector.load %arg13[%223, %c0_61] : memref<64x128xf32, #tpu.memory_space<vmem>>, vector<8x128xf32>
    %225 = tpu.concatenate %197, %220 in 1 : vector<8x32xf32>, vector<8x32xf32> -> vector<8x64xf32>
    %226 = arith.truncf %225 : vector<8x64xf32> to vector<8x64xbf16>
    %c0_62 = arith.constant 0 : index
    %c0_63 = arith.constant 0 : index
    %227 = vector.load %arg5[%c0_62, %c0_63] : memref<64x256xbf16, #tpu.memory_space<vmem>>, vector<64x256xbf16>
    %cst_64 = arith.constant dense<0.000000e+00> : vector<8x256xf32>
    %228 = tpu.matmul %226, %227, %cst_64 {dimension_numbers = #tpu.dot_dimension_numbers<[1], [0], [0], [1], [0, 0, 1, 1], [], []>} : vector<8x64xbf16>, vector<64x256xbf16>, vector<8x256xf32> -> vector<8x256xf32>
    %229 = arith.addf %228, %10 : vector<8x256xf32>
    %230 = vector.extract_strided_slice %229 {offsets = [0, 0], sizes = [8, 128], strides = [1, 1]} : vector<8x256xf32> to vector<8x128xf32>
    %231 = arith.addf %224, %230 : vector<8x128xf32>
    %232 = arith.negf %231 : vector<8x128xf32>
    %233 = math.exp %232 : vector<8x128xf32>
    %cst_65 = arith.constant 1.000000e+00 : f32
    %234 = vector.broadcast %cst_65 : f32 to vector<8x128xf32>
    %235 = arith.addf %234, %233 : vector<8x128xf32>
    %236 = arith.divf %234, %235 : vector<8x128xf32>
    %237 = vector.extract_strided_slice %236 {offsets = [0, 0], sizes = [8, 32], strides = [1, 1]} : vector<8x128xf32> to vector<8x32xf32>
    %238 = vector.extract_strided_slice %236 {offsets = [0, 32], sizes = [8, 32], strides = [1, 1]} : vector<8x128xf32> to vector<8x32xf32>
    %239 = vector.extract_strided_slice %224 {offsets = [0, 64], sizes = [8, 32], strides = [1, 1]} : vector<8x128xf32> to vector<8x32xf32>
    %240 = vector.extract_strided_slice %230 {offsets = [0, 64], sizes = [8, 32], strides = [1, 1]} : vector<8x128xf32> to vector<8x32xf32>
    %241 = arith.mulf %237, %240 : vector<8x32xf32>
    %242 = arith.addf %239, %241 : vector<8x32xf32>
    %243 = math.tanh %242 : vector<8x32xf32>
    %cst_66 = arith.constant 1.000000e+00 : f32
    %244 = vector.broadcast %cst_66 : f32 to vector<8x32xf32>
    %245 = arith.subf %244, %238 : vector<8x32xf32>
    %246 = arith.mulf %245, %243 : vector<8x32xf32>
    %247 = arith.mulf %238, %197 : vector<8x32xf32>
    %248 = arith.addf %246, %247 : vector<8x32xf32>
    %249 = arith.truncf %248 : vector<8x32xf32> to vector<8x32xbf16>
    %c0_67 = arith.constant 0 : index
    %c0_68 = arith.constant 0 : index
    %250 = vector.load %arg7[%c0_67, %c0_68] : memref<32x128xbf16, #tpu.memory_space<vmem>>, vector<32x128xbf16>
    %cst_69 = arith.constant dense<0.000000e+00> : vector<8x128xf32>
    %251 = tpu.matmul %249, %250, %cst_69 {dimension_numbers = #tpu.dot_dimension_numbers<[1], [0], [0], [1], [0, 0, 1, 1], [], []>} : vector<8x32xbf16>, vector<32x128xbf16>, vector<8x128xf32> -> vector<8x128xf32>
    %252 = arith.addf %251, %13 : vector<8x128xf32>
    %253 = vector.extract_strided_slice %229 {offsets = [0, 128], sizes = [8, 128], strides = [1, 1]} : vector<8x256xf32> to vector<8x128xf32>
    %254 = arith.addf %252, %253 : vector<8x128xf32>
    %255 = arith.negf %254 : vector<8x128xf32>
    %256 = math.exp %255 : vector<8x128xf32>
    %cst_70 = arith.constant 1.000000e+00 : f32
    %257 = vector.broadcast %cst_70 : f32 to vector<8x128xf32>
    %258 = arith.addf %257, %256 : vector<8x128xf32>
    %259 = arith.divf %257, %258 : vector<8x128xf32>
    %260 = vector.extract_strided_slice %259 {offsets = [0, 0], sizes = [8, 32], strides = [1, 1]} : vector<8x128xf32> to vector<8x32xf32>
    %261 = vector.extract_strided_slice %259 {offsets = [0, 32], sizes = [8, 32], strides = [1, 1]} : vector<8x128xf32> to vector<8x32xf32>
    %262 = vector.extract_strided_slice %252 {offsets = [0, 64], sizes = [8, 32], strides = [1, 1]} : vector<8x128xf32> to vector<8x32xf32>
    %263 = vector.extract_strided_slice %253 {offsets = [0, 64], sizes = [8, 32], strides = [1, 1]} : vector<8x128xf32> to vector<8x32xf32>
    %264 = arith.mulf %260, %263 : vector<8x32xf32>
    %265 = arith.addf %262, %264 : vector<8x32xf32>
    %266 = math.tanh %265 : vector<8x32xf32>
    %cst_71 = arith.constant 1.000000e+00 : f32
    %267 = vector.broadcast %cst_71 : f32 to vector<8x32xf32>
    %268 = arith.subf %267, %261 : vector<8x32xf32>
    %269 = arith.mulf %268, %266 : vector<8x32xf32>
    %270 = arith.mulf %261, %220 : vector<8x32xf32>
    %271 = arith.addf %269, %270 : vector<8x32xf32>
    %c5_i32 = arith.constant 5 : i32
    %c8_i32_72 = arith.constant 8 : i32
    %272 = arith.muli %c5_i32, %c8_i32_72 : i32
    %273 = tpu.assume_multiple %272, 8 : i32
    %274 = arith.index_cast %273 : i32 to index
    %c0_73 = arith.constant 0 : index
    %275 = vector.load %arg13[%274, %c0_73] : memref<64x128xf32, #tpu.memory_space<vmem>>, vector<8x128xf32>
    %276 = tpu.concatenate %248, %271 in 1 : vector<8x32xf32>, vector<8x32xf32> -> vector<8x64xf32>
    %277 = arith.truncf %276 : vector<8x64xf32> to vector<8x64xbf16>
    %c0_74 = arith.constant 0 : index
    %c0_75 = arith.constant 0 : index
    %278 = vector.load %arg5[%c0_74, %c0_75] : memref<64x256xbf16, #tpu.memory_space<vmem>>, vector<64x256xbf16>
    %cst_76 = arith.constant dense<0.000000e+00> : vector<8x256xf32>
    %279 = tpu.matmul %277, %278, %cst_76 {dimension_numbers = #tpu.dot_dimension_numbers<[1], [0], [0], [1], [0, 0, 1, 1], [], []>} : vector<8x64xbf16>, vector<64x256xbf16>, vector<8x256xf32> -> vector<8x256xf32>
    %280 = arith.addf %279, %10 : vector<8x256xf32>
    %281 = vector.extract_strided_slice %280 {offsets = [0, 0], sizes = [8, 128], strides = [1, 1]} : vector<8x256xf32> to vector<8x128xf32>
    %282 = arith.addf %275, %281 : vector<8x128xf32>
    %283 = arith.negf %282 : vector<8x128xf32>
    %284 = math.exp %283 : vector<8x128xf32>
    %cst_77 = arith.constant 1.000000e+00 : f32
    %285 = vector.broadcast %cst_77 : f32 to vector<8x128xf32>
    %286 = arith.addf %285, %284 : vector<8x128xf32>
    %287 = arith.divf %285, %286 : vector<8x128xf32>
    %288 = vector.extract_strided_slice %287 {offsets = [0, 0], sizes = [8, 32], strides = [1, 1]} : vector<8x128xf32> to vector<8x32xf32>
    %289 = vector.extract_strided_slice %287 {offsets = [0, 32], sizes = [8, 32], strides = [1, 1]} : vector<8x128xf32> to vector<8x32xf32>
    %290 = vector.extract_strided_slice %275 {offsets = [0, 64], sizes = [8, 32], strides = [1, 1]} : vector<8x128xf32> to vector<8x32xf32>
    %291 = vector.extract_strided_slice %281 {offsets = [0, 64], sizes = [8, 32], strides = [1, 1]} : vector<8x128xf32> to vector<8x32xf32>
    %292 = arith.mulf %288, %291 : vector<8x32xf32>
    %293 = arith.addf %290, %292 : vector<8x32xf32>
    %294 = math.tanh %293 : vector<8x32xf32>
    %cst_78 = arith.constant 1.000000e+00 : f32
    %295 = vector.broadcast %cst_78 : f32 to vector<8x32xf32>
    %296 = arith.subf %295, %289 : vector<8x32xf32>
    %297 = arith.mulf %296, %294 : vector<8x32xf32>
    %298 = arith.mulf %289, %248 : vector<8x32xf32>
    %299 = arith.addf %297, %298 : vector<8x32xf32>
    %300 = arith.truncf %299 : vector<8x32xf32> to vector<8x32xbf16>
    %c0_79 = arith.constant 0 : index
    %c0_80 = arith.constant 0 : index
    %301 = vector.load %arg7[%c0_79, %c0_80] : memref<32x128xbf16, #tpu.memory_space<vmem>>, vector<32x128xbf16>
    %cst_81 = arith.constant dense<0.000000e+00> : vector<8x128xf32>
    %302 = tpu.matmul %300, %301, %cst_81 {dimension_numbers = #tpu.dot_dimension_numbers<[1], [0], [0], [1], [0, 0, 1, 1], [], []>} : vector<8x32xbf16>, vector<32x128xbf16>, vector<8x128xf32> -> vector<8x128xf32>
    %303 = arith.addf %302, %13 : vector<8x128xf32>
    %304 = vector.extract_strided_slice %280 {offsets = [0, 128], sizes = [8, 128], strides = [1, 1]} : vector<8x256xf32> to vector<8x128xf32>
    %305 = arith.addf %303, %304 : vector<8x128xf32>
    %306 = arith.negf %305 : vector<8x128xf32>
    %307 = math.exp %306 : vector<8x128xf32>
    %cst_82 = arith.constant 1.000000e+00 : f32
    %308 = vector.broadcast %cst_82 : f32 to vector<8x128xf32>
    %309 = arith.addf %308, %307 : vector<8x128xf32>
    %310 = arith.divf %308, %309 : vector<8x128xf32>
    %311 = vector.extract_strided_slice %310 {offsets = [0, 0], sizes = [8, 32], strides = [1, 1]} : vector<8x128xf32> to vector<8x32xf32>
    %312 = vector.extract_strided_slice %310 {offsets = [0, 32], sizes = [8, 32], strides = [1, 1]} : vector<8x128xf32> to vector<8x32xf32>
    %313 = vector.extract_strided_slice %303 {offsets = [0, 64], sizes = [8, 32], strides = [1, 1]} : vector<8x128xf32> to vector<8x32xf32>
    %314 = vector.extract_strided_slice %304 {offsets = [0, 64], sizes = [8, 32], strides = [1, 1]} : vector<8x128xf32> to vector<8x32xf32>
    %315 = arith.mulf %311, %314 : vector<8x32xf32>
    %316 = arith.addf %313, %315 : vector<8x32xf32>
    %317 = math.tanh %316 : vector<8x32xf32>
    %cst_83 = arith.constant 1.000000e+00 : f32
    %318 = vector.broadcast %cst_83 : f32 to vector<8x32xf32>
    %319 = arith.subf %318, %312 : vector<8x32xf32>
    %320 = arith.mulf %319, %317 : vector<8x32xf32>
    %321 = arith.mulf %312, %271 : vector<8x32xf32>
    %322 = arith.addf %320, %321 : vector<8x32xf32>
    %c6_i32 = arith.constant 6 : i32
    %c8_i32_84 = arith.constant 8 : i32
    %323 = arith.muli %c6_i32, %c8_i32_84 : i32
    %324 = tpu.assume_multiple %323, 8 : i32
    %325 = arith.index_cast %324 : i32 to index
    %c0_85 = arith.constant 0 : index
    %326 = vector.load %arg13[%325, %c0_85] : memref<64x128xf32, #tpu.memory_space<vmem>>, vector<8x128xf32>
    %327 = tpu.concatenate %299, %322 in 1 : vector<8x32xf32>, vector<8x32xf32> -> vector<8x64xf32>
    %328 = arith.truncf %327 : vector<8x64xf32> to vector<8x64xbf16>
    %c0_86 = arith.constant 0 : index
    %c0_87 = arith.constant 0 : index
    %329 = vector.load %arg5[%c0_86, %c0_87] : memref<64x256xbf16, #tpu.memory_space<vmem>>, vector<64x256xbf16>
    %cst_88 = arith.constant dense<0.000000e+00> : vector<8x256xf32>
    %330 = tpu.matmul %328, %329, %cst_88 {dimension_numbers = #tpu.dot_dimension_numbers<[1], [0], [0], [1], [0, 0, 1, 1], [], []>} : vector<8x64xbf16>, vector<64x256xbf16>, vector<8x256xf32> -> vector<8x256xf32>
    %331 = arith.addf %330, %10 : vector<8x256xf32>
    %332 = vector.extract_strided_slice %331 {offsets = [0, 0], sizes = [8, 128], strides = [1, 1]} : vector<8x256xf32> to vector<8x128xf32>
    %333 = arith.addf %326, %332 : vector<8x128xf32>
    %334 = arith.negf %333 : vector<8x128xf32>
    %335 = math.exp %334 : vector<8x128xf32>
    %cst_89 = arith.constant 1.000000e+00 : f32
    %336 = vector.broadcast %cst_89 : f32 to vector<8x128xf32>
    %337 = arith.addf %336, %335 : vector<8x128xf32>
    %338 = arith.divf %336, %337 : vector<8x128xf32>
    %339 = vector.extract_strided_slice %338 {offsets = [0, 0], sizes = [8, 32], strides = [1, 1]} : vector<8x128xf32> to vector<8x32xf32>
    %340 = vector.extract_strided_slice %338 {offsets = [0, 32], sizes = [8, 32], strides = [1, 1]} : vector<8x128xf32> to vector<8x32xf32>
    %341 = vector.extract_strided_slice %326 {offsets = [0, 64], sizes = [8, 32], strides = [1, 1]} : vector<8x128xf32> to vector<8x32xf32>
    %342 = vector.extract_strided_slice %332 {offsets = [0, 64], sizes = [8, 32], strides = [1, 1]} : vector<8x128xf32> to vector<8x32xf32>
    %343 = arith.mulf %339, %342 : vector<8x32xf32>
    %344 = arith.addf %341, %343 : vector<8x32xf32>
    %345 = math.tanh %344 : vector<8x32xf32>
    %cst_90 = arith.constant 1.000000e+00 : f32
    %346 = vector.broadcast %cst_90 : f32 to vector<8x32xf32>
    %347 = arith.subf %346, %340 : vector<8x32xf32>
    %348 = arith.mulf %347, %345 : vector<8x32xf32>
    %349 = arith.mulf %340, %299 : vector<8x32xf32>
    %350 = arith.addf %348, %349 : vector<8x32xf32>
    %351 = arith.truncf %350 : vector<8x32xf32> to vector<8x32xbf16>
    %c0_91 = arith.constant 0 : index
    %c0_92 = arith.constant 0 : index
    %352 = vector.load %arg7[%c0_91, %c0_92] : memref<32x128xbf16, #tpu.memory_space<vmem>>, vector<32x128xbf16>
    %cst_93 = arith.constant dense<0.000000e+00> : vector<8x128xf32>
    %353 = tpu.matmul %351, %352, %cst_93 {dimension_numbers = #tpu.dot_dimension_numbers<[1], [0], [0], [1], [0, 0, 1, 1], [], []>} : vector<8x32xbf16>, vector<32x128xbf16>, vector<8x128xf32> -> vector<8x128xf32>
    %354 = arith.addf %353, %13 : vector<8x128xf32>
    %355 = vector.extract_strided_slice %331 {offsets = [0, 128], sizes = [8, 128], strides = [1, 1]} : vector<8x256xf32> to vector<8x128xf32>
    %356 = arith.addf %354, %355 : vector<8x128xf32>
    %357 = arith.negf %356 : vector<8x128xf32>
    %358 = math.exp %357 : vector<8x128xf32>
    %cst_94 = arith.constant 1.000000e+00 : f32
    %359 = vector.broadcast %cst_94 : f32 to vector<8x128xf32>
    %360 = arith.addf %359, %358 : vector<8x128xf32>
    %361 = arith.divf %359, %360 : vector<8x128xf32>
    %362 = vector.extract_strided_slice %361 {offsets = [0, 0], sizes = [8, 32], strides = [1, 1]} : vector<8x128xf32> to vector<8x32xf32>
    %363 = vector.extract_strided_slice %361 {offsets = [0, 32], sizes = [8, 32], strides = [1, 1]} : vector<8x128xf32> to vector<8x32xf32>
    %364 = vector.extract_strided_slice %354 {offsets = [0, 64], sizes = [8, 32], strides = [1, 1]} : vector<8x128xf32> to vector<8x32xf32>
    %365 = vector.extract_strided_slice %355 {offsets = [0, 64], sizes = [8, 32], strides = [1, 1]} : vector<8x128xf32> to vector<8x32xf32>
    %366 = arith.mulf %362, %365 : vector<8x32xf32>
    %367 = arith.addf %364, %366 : vector<8x32xf32>
    %368 = math.tanh %367 : vector<8x32xf32>
    %cst_95 = arith.constant 1.000000e+00 : f32
    %369 = vector.broadcast %cst_95 : f32 to vector<8x32xf32>
    %370 = arith.subf %369, %363 : vector<8x32xf32>
    %371 = arith.mulf %370, %368 : vector<8x32xf32>
    %372 = arith.mulf %363, %322 : vector<8x32xf32>
    %373 = arith.addf %371, %372 : vector<8x32xf32>
    %c7_i32 = arith.constant 7 : i32
    %c8_i32_96 = arith.constant 8 : i32
    %374 = arith.muli %c7_i32, %c8_i32_96 : i32
    %375 = tpu.assume_multiple %374, 8 : i32
    %376 = arith.index_cast %375 : i32 to index
    %c0_97 = arith.constant 0 : index
    %377 = vector.load %arg13[%376, %c0_97] : memref<64x128xf32, #tpu.memory_space<vmem>>, vector<8x128xf32>
    %378 = tpu.concatenate %350, %373 in 1 : vector<8x32xf32>, vector<8x32xf32> -> vector<8x64xf32>
    %379 = arith.truncf %378 : vector<8x64xf32> to vector<8x64xbf16>
    %c0_98 = arith.constant 0 : index
    %c0_99 = arith.constant 0 : index
    %380 = vector.load %arg5[%c0_98, %c0_99] : memref<64x256xbf16, #tpu.memory_space<vmem>>, vector<64x256xbf16>
    %cst_100 = arith.constant dense<0.000000e+00> : vector<8x256xf32>
    %381 = tpu.matmul %379, %380, %cst_100 {dimension_numbers = #tpu.dot_dimension_numbers<[1], [0], [0], [1], [0, 0, 1, 1], [], []>} : vector<8x64xbf16>, vector<64x256xbf16>, vector<8x256xf32> -> vector<8x256xf32>
    %382 = arith.addf %381, %10 : vector<8x256xf32>
    %383 = vector.extract_strided_slice %382 {offsets = [0, 0], sizes = [8, 128], strides = [1, 1]} : vector<8x256xf32> to vector<8x128xf32>
    %384 = arith.addf %377, %383 : vector<8x128xf32>
    %385 = arith.negf %384 : vector<8x128xf32>
    %386 = math.exp %385 : vector<8x128xf32>
    %cst_101 = arith.constant 1.000000e+00 : f32
    %387 = vector.broadcast %cst_101 : f32 to vector<8x128xf32>
    %388 = arith.addf %387, %386 : vector<8x128xf32>
    %389 = arith.divf %387, %388 : vector<8x128xf32>
    %390 = vector.extract_strided_slice %389 {offsets = [0, 0], sizes = [8, 32], strides = [1, 1]} : vector<8x128xf32> to vector<8x32xf32>
    %391 = vector.extract_strided_slice %389 {offsets = [0, 32], sizes = [8, 32], strides = [1, 1]} : vector<8x128xf32> to vector<8x32xf32>
    %392 = vector.extract_strided_slice %377 {offsets = [0, 64], sizes = [8, 32], strides = [1, 1]} : vector<8x128xf32> to vector<8x32xf32>
    %393 = vector.extract_strided_slice %383 {offsets = [0, 64], sizes = [8, 32], strides = [1, 1]} : vector<8x128xf32> to vector<8x32xf32>
    %394 = arith.mulf %390, %393 : vector<8x32xf32>
    %395 = arith.addf %392, %394 : vector<8x32xf32>
    %396 = math.tanh %395 : vector<8x32xf32>
    %cst_102 = arith.constant 1.000000e+00 : f32
    %397 = vector.broadcast %cst_102 : f32 to vector<8x32xf32>
    %398 = arith.subf %397, %391 : vector<8x32xf32>
    %399 = arith.mulf %398, %396 : vector<8x32xf32>
    %400 = arith.mulf %391, %350 : vector<8x32xf32>
    %401 = arith.addf %399, %400 : vector<8x32xf32>
    %402 = arith.truncf %401 : vector<8x32xf32> to vector<8x32xbf16>
    %c0_103 = arith.constant 0 : index
    %c0_104 = arith.constant 0 : index
    %403 = vector.load %arg7[%c0_103, %c0_104] : memref<32x128xbf16, #tpu.memory_space<vmem>>, vector<32x128xbf16>
    %cst_105 = arith.constant dense<0.000000e+00> : vector<8x128xf32>
    %404 = tpu.matmul %402, %403, %cst_105 {dimension_numbers = #tpu.dot_dimension_numbers<[1], [0], [0], [1], [0, 0, 1, 1], [], []>} : vector<8x32xbf16>, vector<32x128xbf16>, vector<8x128xf32> -> vector<8x128xf32>
    %405 = arith.addf %404, %13 : vector<8x128xf32>
    %406 = vector.extract_strided_slice %382 {offsets = [0, 128], sizes = [8, 128], strides = [1, 1]} : vector<8x256xf32> to vector<8x128xf32>
    %407 = arith.addf %405, %406 : vector<8x128xf32>
    %408 = arith.negf %407 : vector<8x128xf32>
    %409 = math.exp %408 : vector<8x128xf32>
    %cst_106 = arith.constant 1.000000e+00 : f32
    %410 = vector.broadcast %cst_106 : f32 to vector<8x128xf32>
    %411 = arith.addf %410, %409 : vector<8x128xf32>
    %412 = arith.divf %410, %411 : vector<8x128xf32>
    %413 = vector.extract_strided_slice %412 {offsets = [0, 0], sizes = [8, 32], strides = [1, 1]} : vector<8x128xf32> to vector<8x32xf32>
    %414 = vector.extract_strided_slice %412 {offsets = [0, 32], sizes = [8, 32], strides = [1, 1]} : vector<8x128xf32> to vector<8x32xf32>
    %415 = vector.extract_strided_slice %405 {offsets = [0, 64], sizes = [8, 32], strides = [1, 1]} : vector<8x128xf32> to vector<8x32xf32>
    %416 = vector.extract_strided_slice %406 {offsets = [0, 64], sizes = [8, 32], strides = [1, 1]} : vector<8x128xf32> to vector<8x32xf32>
    %417 = arith.mulf %413, %416 : vector<8x32xf32>
    %418 = arith.addf %415, %417 : vector<8x32xf32>
    %419 = math.tanh %418 : vector<8x32xf32>
    %cst_107 = arith.constant 1.000000e+00 : f32
    %420 = vector.broadcast %cst_107 : f32 to vector<8x32xf32>
    %421 = arith.subf %420, %414 : vector<8x32xf32>
    %422 = arith.mulf %421, %419 : vector<8x32xf32>
    %423 = arith.mulf %414, %373 : vector<8x32xf32>
    %424 = arith.addf %422, %423 : vector<8x32xf32>
    %c8_i32_108 = arith.constant 8 : i32
    %cst_109 = arith.constant 0.000000e+00 : f32
    %425 = vector.broadcast %cst_109 : f32 to vector<8x64xf32>
    %426 = tpu.concatenate %401, %424, %425 in 1 : vector<8x32xf32>, vector<8x32xf32>, vector<8x64xf32> -> vector<8x128xf32>
    %c0_110 = arith.constant 0 : index
    %c0_111 = arith.constant 0 : index
    %427 = vector.load %arg12[%c0_110, %c0_111] : memref<8x128xf32, #tpu.memory_space<vmem>>, vector<8x128xf32>
    tpu.vector_store %arg12[%c0_110, %c0_111], %426 {strides = array<i32>} : memref<8x128xf32, #tpu.memory_space<vmem>>, vector<8x128xf32>,
    %cst_112 = arith.constant 0.000000e+00 : f32
    %428 = vector.broadcast %cst_112 : f32 to vector<8x32xf32>
    %429 = arith.maximumf %424, %428 : vector<8x32xf32>
    %430 = arith.truncf %429 : vector<8x32xf32> to vector<8x32xbf16>
    %c0_113 = arith.constant 0 : index
    %c0_114 = arith.constant 0 : index
    %431 = vector.load %arg9[%c0_113, %c0_114] : memref<32x128xbf16, #tpu.memory_space<vmem>>, vector<32x128xbf16>
    %cst_115 = arith.constant dense<0.000000e+00> : vector<8x128xf32>
    %432 = tpu.matmul %430, %431, %cst_115 {dimension_numbers = #tpu.dot_dimension_numbers<[1], [0], [0], [1], [0, 0, 1, 1], [], []>} : vector<8x32xbf16>, vector<32x128xbf16>, vector<8x128xf32> -> vector<8x128xf32>
    %c0_116 = arith.constant 0 : index
    %c0_117 = arith.constant 0 : index
    %433 = vector.load %arg10[%c0_116, %c0_117] : memref<1x128xf32, #tpu.memory_space<vmem>>, vector<1x128xf32>
    %434 = vector.broadcast %433 : vector<1x128xf32> to vector<8x128xf32>
    %435 = arith.addf %432, %434 : vector<8x128xf32>
    %c0_118 = arith.constant 0 : index
    %c0_119 = arith.constant 0 : index
    %436 = vector.load %arg11[%c0_118, %c0_119] : memref<8x128xf32, #tpu.memory_space<vmem>>, vector<8x128xf32>
    tpu.vector_store %arg11[%c0_118, %c0_119], %435 {strides = array<i32>} : memref<8x128xf32, #tpu.memory_space<vmem>>, vector<8x128xf32>,
    return
  }
  func.func @transform_0(%arg0: i32) -> (i32, i32) {
    %c0_i32 = arith.constant 0 : i32
    %c0_i32_0 = arith.constant 0 : i32
    %c0_i32_1 = arith.constant 0 : i32
    return %c0_i32, %c0_i32_0 : i32, i32
  }
  func.func @transform_1(%arg0: i32) -> (i32, i32) {
    %c0_i32 = arith.constant 0 : i32
    %c0_i32_0 = arith.constant 0 : i32
    %c0_i32_1 = arith.constant 0 : i32
    return %c0_i32, %c0_i32_0 : i32, i32
  }
  func.func @transform_2(%arg0: i32) -> (i32, i32) {
    %c0_i32 = arith.constant 0 : i32
    %c0_i32_0 = arith.constant 0 : i32
    %c0_i32_1 = arith.constant 0 : i32
    return %c0_i32, %c0_i32_0 : i32, i32
  }
  func.func @transform_3(%arg0: i32) -> (i32, i32) {
    %c0_i32 = arith.constant 0 : i32
    %c0_i32_0 = arith.constant 0 : i32
    %c0_i32_1 = arith.constant 0 : i32
    return %c0_i32, %c0_i32_0 : i32, i32
  }
  func.func @transform_4(%arg0: i32) -> (i32, i32) {
    %c0_i32 = arith.constant 0 : i32
    %c0_i32_0 = arith.constant 0 : i32
    %c0_i32_1 = arith.constant 0 : i32
    return %c0_i32, %c0_i32_0 : i32, i32
  }
  func.func @transform_5(%arg0: i32) -> (i32, i32) {
    %c0_i32 = arith.constant 0 : i32
    %c0_i32_0 = arith.constant 0 : i32
    %c0_i32_1 = arith.constant 0 : i32
    return %c0_i32, %c0_i32_0 : i32, i32
  }
  func.func @transform_6(%arg0: i32) -> (i32, i32) {
    %c0_i32 = arith.constant 0 : i32
    %c0_i32_0 = arith.constant 0 : i32
    %c0_i32_1 = arith.constant 0 : i32
    return %c0_i32, %c0_i32_0 : i32, i32
  }
  func.func @transform_7(%arg0: i32) -> (i32, i32) {
    %c0_i32 = arith.constant 0 : i32
    %c0_i32_0 = arith.constant 0 : i32
    %c0_i32_1 = arith.constant 0 : i32
    return %c0_i32, %c0_i32_0 : i32, i32
  }
  func.func @transform_8(%arg0: i32) -> (i32, i32) {
    %c0_i32 = arith.constant 0 : i32
    %c0_i32_0 = arith.constant 0 : i32
    %c0_i32_1 = arith.constant 0 : i32
    return %c0_i32, %c0_i32_0 : i32, i32
  }
  func.func @transform_9(%arg0: i32) -> (i32, i32) {
    %c0_i32 = arith.constant 0 : i32
    %c0_i32_0 = arith.constant 0 : i32
    %c0_i32_1 = arith.constant 0 : i32
    return %c0_i32, %c0_i32_0 : i32, i32
  }
  func.func @transform_10(%arg0: i32) -> (i32, i32) {
    %c0_i32 = arith.constant 0 : i32
    %c0_i32_0 = arith.constant 0 : i32
    %c0_i32_1 = arith.constant 0 : i32
    return %c0_i32, %c0_i32_0 : i32, i32
  }
  func.func @transform_11(%arg0: i32) -> (i32, i32) {
    %c0_i32 = arith.constant 0 : i32
    %c0_i32_0 = arith.constant 0 : i32
    %c0_i32_1 = arith.constant 0 : i32
    return %c0_i32, %c0_i32_0 : i32, i32
  }
}

</mosaic_0001>

<bundles_post_ra>
// kernel: grunet_forward.1
= control target key start
LH: loop header
LB: loop body
LE: loop exit
PB: predicated region body
PF: predicated region fallthrough
CT: control target
= control target key end

     0   :  { %v1825_v1 = vmov 0   ;;  %vm65_vm0 = vcmask 130048   ;;  %vm221_vm1 = vcmask 523264   ;;  %v153_v18 = vlaneseq  ;;  %s1828_s18 = smov 96   ;;  %s2375_s4 = inlined_call_operand.vmem [shape: bf16[64,256], index: 4, kind: input, shape index: {}]   ;;  %s2376_s2 = inlined_call_operand.vmem [shape: bf16[16,128], index: 2, kind: input, shape index: {}]   ;;  %s2377_s0 = inlined_call_operand.vmem [shape: f32[64,16], index: 0, kind: input, shape index: {}]   ;;  %s2378_s1 = inlined_call_operand.vmem [shape: f32[8,128], index: 1, kind: input, shape index: {}, may-alias: {1,11}]   ;;  %s2379_s5 = inlined_call_operand.vmem [shape: f32[1,256], index: 5, kind: input, shape index: {}]   ;;  %s2380_s3 = inlined_call_operand.vmem [shape: f32[1,128], index: 3, kind: input, shape index: {}]   ;;  %s2381_s6 = inlined_call_operand.vmem [shape: bf16[32,128], index: 6, kind: input, shape index: {}]   ;;  %s2382_s7 = inlined_call_operand.vmem [shape: f32[1,128], index: 7, kind: input, shape index: {}]   ;;  %s2383_s8 = inlined_call_operand.vmem [shape: bf16[32,128], index: 8, kind: input, shape index: {}]   ;;  %s2384_s11 = inlined_call_operand.vmem [shape: f32[8,128], index: 11, kind: output, shape index: {1}, may-alias: {1,11}]   ;;  %s2385_s9 = inlined_call_operand.vmem [shape: f32[1,128], index: 9, kind: input, shape index: {}]   ;;  %s2386_s10 = inlined_call_operand.vmem [shape: f32[8,128], index: 10, kind: output, shape index: {0}]  }
   0x1   :  { %v1894_v0 = vld [vmem:[%s2375_s4 + $0x4] ss:$8 sps:$4 sm:$0xff]   ;;  %257 = vmatprep.mubr.bf16.mxu1 %v1825_v1  ;;  %v1900_v2 = vld [vmem:[%s2375_s4] ss:$8 sps:$4 sm:$0xff]   ;;  %v1906_v3 = vld [vmem:[%s2375_s4 + $0x14] ss:$8 sps:$4 sm:$0xff]  }
   0x2   :  { %225 = vmatprep.subr.bf16.mxu1 %v1894_v0  ;;  %v1912_v4 = vld [vmem:[%s2375_s4 + $0x10] ss:$8 sps:$4 sm:$0xff]   ;;  %v1917_v5 = vld [vmem:[%s2375_s4 + $0x24] ss:$8 sps:$4 sm:$0xff]   ;;  %v1933_v9 = vld [vmem:[%s2375_s4 + $0x20] ss:$8 sps:$4 sm:$0xff]  }
   0x3   :  { %226 = vmatpush1.bf16.msra.mxu1 %v1900_v2  ;;  %v1712_v6 = vld [vmem:[%s2376_s2] sm:$0xff]   ;;  %v39_v8 = vld [vmem:[%s2377_s0 + $0x8] sm:$0xff]  ;;  %v40_v11 = vld [vmem:[%s2377_s0 + $0x10] sm:$0xff]  ;;  %v154_v19 = vshrl.u32 %v153_v18, 7  ;;  %v1827_v48 = vmov 0.0   ;;  %vm1829_vm2 = vmmov 0  }
   0x4   :  { %227 = vmatprep.subr.bf16.mxu1 %v1906_v3  ;;  %1615 = vmatprep.subr.bf16.mxu0 %v1712_v6  ;;  %v38_v7 = vld [vmem:[%s2377_s0] sm:$0xff]  ;;  %v41_v12 = vld [vmem:[%s2377_s0 + $0x18] sm:$0xff]  ;;  %v43_v46 = vld [vmem:[%s2377_s0 + $0x28] sm:$0xff]  ;;  %vm316_vm3 = vcmask 261120  }
   0x5   :  { %1616 = vmatpush3.bf16.msra.mxu0 %v1712_v6  ;;  %v46_v10 = vpack.c.bf16 %v39_v8, %v38_v7  ;;  %v1945_v13 = vld [vmem:[%s2375_s4 + $0x34] ss:$8 sps:$4 sm:$0xff]   ;;  %v47_v14 = vpack.c.bf16 %v41_v12, %v40_v11  ;;  %v1953_v15 = vld [vmem:[%s2375_s4 + $0x30] ss:$8 sps:$4 sm:$0xff]   ;;  %v1958_v16 = vld [vmem:[%s2378_s1] sm:$0xff]  ;;  %v159_v21 = vsub.s32 1, %v154_v19 }
   0x6   :  { %v172_v17 = vpack.c.bf16 %v1958_v16, %v1958_v16  ;;  %v151_v20 = vld [vmem:[%s2379_s5] sm:$0x3]  ;;  %v155_v25 = vsub.s32 0, %v154_v19  ;;  %s1826_s5 = smov 64   ;;  %v44_v47 = vld [vmem:[%s2377_s0 + $0x30] sm:$0xff]  ;;  %1625 = vmatprep.subr.bf16.mxu0 %v1827_v48  ;;  %v45_v52 = vld [vmem:[%s2377_s0 + $0x38] sm:$0xff] }
   0x7   :  { %228 = vmatpush1.bf16.msra.mxu1 %v1912_v4  ;;  %1617 = vmatprep.mubr.msk.bf16.mxu0 %vm65_vm0, %v46_v10  ;;  %v1977_v22 = vrot.slane %v151_v20, %v159_v21  ;;  %v1992_v34 = vld [vmem:[%s2380_s3] ss:$0 sm:$0xff]  ;;  %v49_v53 = vpack.c.bf16 %v45_v52, %v44_v47  ;;  %v2020_v54 = vld [vmem:[%s2381_s6 + $0x8] sm:$0xff]  }
   0x8   :  { %229 = vmatprep.subr.bf16.mxu1 %v1917_v5  ;;  %1618 = vmatmul.mubr.msk.bf16.vlgmr.msra.gmra.mrb[0].mxu0 %vm65_vm0, %v47_v14  ;;  %v1985_v28 = vrot.slane %v151_v20, %v155_v25  ;;  %v42_v45 = vld [vmem:[%s2377_s0 + $0x20] sm:$0xff]  ;;  %s1830_s0 = smov 32  }
   0x9   :  { %v2009_v49 = vld [vmem:[%s2381_s6] sm:$0xff]   ;;  %v48_v50 = vpack.c.bf16 %v43_v46, %v42_v45 }
   0xa   :  { %1626 = vmatpush3.bf16.msra.mxu0 %v2009_v49  ;;  %v2055_v11 = vld [vmem:[%s2382_s7] ss:$0 sm:$0xff] }
   0xb   :  { %230 = vmatpush1.bf16.msra.mxu1 %v1933_v9  ;;  %1621 = vmatprep.mubr.msk.bf16.mxu0 %vm65_vm0, %v48_v50 }
   0xc   :  { %231 = vmatprep.subr.bf16.mxu1 %v1945_v13  ;;  %1627 = vmatprep.subr.bf16.mxu0 %v1827_v48 }
   0xe   :  { %1628 = vmatpush3.bf16.msra.mxu0 %v2020_v54 }
   0xf   :  { %232 = vmatpush1.bf16.msra.mxu1 %v1953_v15  ;;  %1633 = vmatprep.subr.bf16.mxu0 %v1827_v48 }
  0x10   :  { %397 = vmatprep.subr.bf16.mxu1 %v1894_v0  ;;  %1622 = vmatmul.mubr.msk.bf16.gmra.mrb[4].mxu0 %vm65_vm0, %v49_v53 }
  0x11   :  { %1629 = vmatprep.mubr.msk.bf16.mxu0 %vm1829_vm2, %v1827_v48 }
  0x12   :  { %1545 = vmatmul.mubr.msk.bf16.vlgmr.msra.gmra.mrb[0].mxu1 %vm221_vm1, %v172_v17 }
  0x13   :  { %398 = vmatpush1.bf16.msra.mxu1 %v1900_v2  ;;  %429 = vmatprep.mubr.bf16.mxu1 %v1825_v1 }
  0x14   :  { %399 = vmatprep.subr.bf16.mxu1 %v1906_v3 }
  0x17   :  { %400 = vmatpush1.bf16.msra.mxu1 %v1912_v4 }
  0x18   :  { %401 = vmatprep.subr.bf16.mxu1 %v1917_v5 }
  0x1b   :  { %402 = vmatpush1.bf16.msra.mxu1 %v1933_v9 }
  0x1c   :  { %403 = vmatprep.subr.bf16.mxu1 %v1945_v13 }
  0x1f   :  { %404 = vmatpush1.bf16.msra.mxu1 %v1953_v15 }
  0x20   :  { %1641 = vmatprep.subr.bf16.mxu1 %v1827_v48 }
  0xdb   :  { %v1979_v23 = vpop.f32.mrb[0].mxu0 }
  0xdc   :  { %v112_v24 = vpop.f32.mrb[1].mxu0 }
  0xdd   :  { %v1981_v26 = vpop.f32.mrb[2].mxu0  ;;  %v113_v35 = vadd.f32 %v1992_v34, %v112_v24 }
  0xde   :  { %v1983_v27 = vpop.f32.mrb[3].mxu0 }
  0xdf   :  { %v116_v50 = vadd.f32 %v1992_v34, %v1983_v27 }
  0xe3   :  { %v2037_v63 = vpop.f32.mrb[4].mxu0 }
  0xe4   :  { %v2039_v6 = vpop.f32.mrb[5].mxu0 }
  0xe5   :  { %v259_v29 = vpop.f32.mrb[0].mxu1  ;;  %v2041_v7 = vpop.f32.mrb[6].mxu0 }
  0xe6   :  { %v260_v30 = vadd.f32 %v259_v29, %v1985_v28  ;;  %v261_v31 = vpop.f32.mrb[1].mxu1  ;;  %v2043_v8 = vpop.f32.mrb[7].mxu0 }
  0xe7   :  { %v263_v32 = vpop.f32.mrb[2].mxu1  ;;  %v262_v55 = vadd.f32 %v261_v31, %v1977_v22 }
  0xe8   :  { %v264_v33 = vpop.f32.mrb[3].mxu1  ;;  %274 = vrot.lane.b32.xlu0 %v260_v30, %s1826_s5  ;;  %v266_v36 = vadd.f32 %v260_v30, %v113_v35 }
  0xea   :  { %v1546_v37 = vmul.f32 -1.442695, %v266_v36 }
  0xec   :  { %1720 = vpow2.f32 %v1546_v37 }
  0xf6   :  { %v1721_v38 = vpop.eup %1720 }
  0xf7   :  { %v270_v39 = vadd.f32 1.0, %v1721_v38 }
  0xf9   :  { %1722 = vrcp.f32 %v270_v39 }
 0x103   :  { %v1723_v40 = vpop.eup %1722 }
 0x104   :  { %v284_v57 = vsub.f32 1.0, %v1723_v40 }
 0x15a   :  { %v275_v41 = vpop.permute.xlu0 %274 }
 0x15b   :  { %v277_v42 = vmul.f32 %v1723_v40, %v275_v41 }
 0x15d   :  { %279 = vrot.lane.b32.xlu0 %v277_v42, %s1826_s5 }
 0x1cf   :  { %v280_v43 = vpop.permute.xlu0 %279 }
 0x1d0   :  { %v282_v44 = vadd.f32 %v280_v43, %v113_v35 }
 0x1d2   :  { %1724 = vtanh.f32 %v282_v44 }
 0x1dc   :  { %v1725_v51 = vpop.eup %1724 }
 0x1dd   :  { %286 = vrot.lane.b32.xlu1 %v1725_v51, %s1828_s18 }
 0x1e1   :  { %291 = vrot.lane.b32.xlu1 %v1958_v16, %s1830_s0 }
 0x1e5   :  { %368 = vrot.lane.b32.xlu1 %v262_v55, %s1826_s5 }
 0x24f   :  { %v287_v56 = vpop.permute.xlu1 %286 }
 0x250   :  { %v289_v59 = vmul.f32 %v287_v56, %v284_v57 }
 0x253   :  { %v292_v58 = vpop.permute.xlu1 %291 }
 0x254   :  { %v294_v60 = vmul.f32 %v1723_v40, %v292_v58 }
 0x256   :  { %v2032_v61 = vadd.f32 %v294_v60, %v289_v59 }
 0x257   :  { %v369_v30 = vpop.permute.xlu1 %368 }
 0x258   :  { %v296_v62 = vpack.c.bf16 %v2032_v61, %v2032_v61 }
 0x25a   :  { %302 = vrot.lane.b32.xlu0 %v296_v62, %s1828_s18 }
 0x2cc   :  { %v303_v10 = vpop.permute.xlu0 %302 }
 0x2cd   :  { %1630 = vmatmul.mubr.msk.bf16.vlgmr.msra.gmra.mrb[8].mxu0 %vm316_vm3, %v303_v10 }
 0x2ce   :  { %1634 = vmatpush3.bf16.msra.mxu0 %v2009_v49  ;;  %1637 = vmatprep.mubr.msk.bf16.mxu0 %vm1829_vm2, %v1827_v48 }
 0x2cf   :  { %1635 = vmatprep.subr.bf16.mxu0 %v1827_v48 }
 0x2d2   :  { %1636 = vmatpush3.bf16.msra.mxu0 %v2020_v54 }
 0x2d3   :  { %548 = vmatprep.subr.bf16.mxu0 %v1894_v0 }
 0x3a0   :  { %v354_v12 = vpop.f32.mrb[8].mxu0 }
 0x3a1   :  { %v355_v14 = vadd.f32 %v2055_v11, %v354_v12  ;;  %v1631_v17 = vpop.f32.mrb[9].mxu0 }
 0x3a2   :  { %v357_v18 = vpop.f32.mrb[10].mxu0 }
 0x3a3   :  { %v360_v19 = vadd.f32 %v355_v14, %v262_v55  ;;  %v1632_v20 = vpop.f32.mrb[11].mxu0 }
 0x3a5   :  { %v1550_v21 = vmul.f32 -1.442695, %v360_v19 }
 0x3a7   :  { %1726 = vpow2.f32 %v1550_v21 }
 0x3b1   :  { %v1727_v24 = vpop.eup %1726 }
 0x3b2   :  { %v364_v25 = vadd.f32 1.0, %v1727_v24 }
 0x3b4   :  { %1728 = vrcp.f32 %v364_v25 }
 0x3be   :  { %v1729_v29 = vpop.eup %1728 }
 0x3bf   :  { %v371_v31 = vmul.f32 %v1729_v29, %v369_v30  ;;  %v378_v36 = vsub.f32 1.0, %v1729_v29  ;;  %v384_v38 = vmul.f32 %v1729_v29, %v1958_v16 }
 0x3c1   :  { %373 = vrot.lane.b32.xlu0 %v371_v31, %s1826_s5 }
 0x3c5   :  { %389 = vrot.lane.b32.xlu0 %v2032_v61, %s1828_s18 }
 0x433   :  { %v374_v32 = vpop.permute.xlu0 %373 }
 0x434   :  { %v376_v33 = vadd.f32 %v374_v32, %v355_v14 }
 0x436   :  { %1730 = vtanh.f32 %v376_v33 }
 0x437   :  { %v390_v41 = vpop.permute.xlu0 %389 }
 0x440   :  { %v1731_v35 = vpop.eup %1730 }
 0x441   :  { %380 = vrot.lane.b32.xlu1 %v1731_v35, %s1828_s18 }
 0x4b3   :  { %v381_v37 = vpop.permute.xlu1 %380 }
 0x4b4   :  { %v383_v39 = vmul.f32 %v381_v37, %v378_v36 }
 0x4b6   :  { %v2063_v40 = vadd.f32 %v384_v38, %v383_v39 }
 0x4b8   :  { %v392_v42 = vsel %vm316_vm3, %v390_v41, %v2063_v40 }
 0x4b9   :  { %v393_v43 = vpack.c.bf16 %v392_v42, %v392_v42 }
 0x4bb   :  { %1551 = vmatmul.mubr.msk.bf16.vlgmr.msra.gmra.mrb[4].mxu1 %vm221_vm1, %v393_v43 }
 0x4bc   :  { %1642 = vmatpush3.bf16.msra.mxu1 %v2009_v49  ;;  %1645 = vmatprep.mubr.msk.bf16.mxu1 %vm1829_vm2, %v1827_v48 }
 0x4bd   :  { %1643 = vmatprep.subr.bf16.mxu1 %v1827_v48 }
 0x4c0   :  { %1644 = vmatpush3.bf16.msra.mxu1 %v2020_v54 }
 0x4c1   :  { %699 = vmatprep.subr.bf16.mxu1 %v1894_v0 }
 0x58e   :  { %v431_v16 = vpop.f32.mrb[4].mxu1 }
 0x58f   :  { %v432_v44 = vadd.f32 %v431_v16, %v1985_v28  ;;  %v433_v45 = vpop.f32.mrb[5].mxu1 }
 0x590   :  { %v435_v46 = vpop.f32.mrb[6].mxu1  ;;  %v434_v10 = vadd.f32 %v433_v45, %v1977_v22 }
 0x591   :  { %v436_v47 = vpop.f32.mrb[7].mxu1  ;;  %446 = vrot.lane.b32.xlu1 %v432_v44, %s1826_s5  ;;  %v438_v51 = vadd.f32 %v432_v44, %v116_v50 }
 0x593   :  { %v1552_v52 = vmul.f32 -1.442695, %v438_v51 }
 0x595   :  { %1732 = vpow2.f32 %v1552_v52 }
 0x59f   :  { %v1733_v53 = vpop.eup %1732 }
 0x5a0   :  { %v442_v55 = vadd.f32 1.0, %v1733_v53 }
 0x5a2   :  { %1734 = vrcp.f32 %v442_v55 }
 0x5ac   :  { %v1735_v56 = vpop.eup %1734 }
 0x5ad   :  { %v456_v27 = vsub.f32 1.0, %v1735_v56  ;;  %v462_v14 = vmul.f32 %v1735_v56, %v2032_v61 }
 0x603   :  { %v447_v57 = vpop.permute.xlu1 %446 }
 0x604   :  { %v449_v58 = vmul.f32 %v1735_v56, %v447_v57  ;;  %v121_v56 = vadd.f32 %v1979_v23, %v1992_v34 }
 0x606   :  { %451 = vrot.lane.b32.xlu0 %v449_v58, %s1826_s5 }
 0x678   :  { %v452_v59 = vpop.permute.xlu0 %451 }
 0x679   :  { %v454_v60 = vadd.f32 %v452_v59, %v116_v50 }
 0x67b   :  { %1736 = vtanh.f32 %v454_v60 }
 0x685   :  { %v1737_v62 = vpop.eup %1736 }
 0x686   :  { %458 = vrot.lane.b32.xlu1 %v1737_v62, %s1828_s18 }
 0x68a   :  { %519 = vrot.lane.b32.xlu1 %v434_v10, %s1826_s5 }
 0x6f8   :  { %v459_v12 = vpop.permute.xlu1 %458 }
 0x6f9   :  { %v461_v17 = vmul.f32 %v459_v12, %v456_v27 }
 0x6fb   :  { %v2083_v18 = vadd.f32 %v462_v14, %v461_v17 }
 0x6fc   :  { %v520_v36 = vpop.permute.xlu1 %519 }
 0x6fd   :  { %v464_v19 = vpack.c.bf16 %v2083_v18, %v2083_v18 }
 0x6ff   :  { %466 = vrot.lane.b32.xlu0 %v464_v19, %s1828_s18 }
 0x771   :  { %v467_v20 = vpop.permute.xlu0 %466 }
 0x772   :  { %1638 = vmatmul.mubr.msk.bf16.vlgmr.msra.gmra.mrb[12].mxu0 %vm316_vm3, %v467_v20 }
 0x773   :  { %549 = vmatpush1.bf16.msra.mxu0 %v1900_v2  ;;  %580 = vmatprep.mubr.bf16.mxu0 %v1825_v1 }
 0x774   :  { %550 = vmatprep.subr.bf16.mxu0 %v1906_v3 }
 0x777   :  { %551 = vmatpush1.bf16.msra.mxu0 %v1912_v4 }
 0x778   :  { %552 = vmatprep.subr.bf16.mxu0 %v1917_v5 }
 0x77b   :  { %553 = vmatpush1.bf16.msra.mxu0 %v1933_v9 }
 0x77c   :  { %554 = vmatprep.subr.bf16.mxu0 %v1945_v13 }
 0x77f   :  { %555 = vmatpush1.bf16.msra.mxu0 %v1953_v15 }
 0x780   :  { %1649 = vmatprep.subr.bf16.mxu0 %v1827_v48 }
 0x845   :  { %v505_v61 = vpop.f32.mrb[12].mxu0 }
 0x846   :  { %v506_v21 = vadd.f32 %v2055_v11, %v505_v61  ;;  %v1639_v24 = vpop.f32.mrb[13].mxu0 }
 0x847   :  { %v508_v25 = vpop.f32.mrb[14].mxu0 }
 0x848   :  { %v511_v29 = vadd.f32 %v506_v21, %v434_v10  ;;  %v1640_v30 = vpop.f32.mrb[15].mxu0 }
 0x84a   :  { %v1554_v31 = vmul.f32 -1.442695, %v511_v29 }
 0x84c   :  { %1738 = vpow2.f32 %v1554_v31 }
 0x856   :  { %v1739_v32 = vpop.eup %1738 }
 0x857   :  { %v515_v33 = vadd.f32 1.0, %v1739_v32 }
 0x859   :  { %1740 = vrcp.f32 %v515_v33 }
 0x863   :  { %v1741_v35 = vpop.eup %1740 }
 0x864   :  { %v522_v37 = vmul.f32 %v1741_v35, %v520_v36  ;;  %v529_v42 = vsub.f32 1.0, %v1741_v35  ;;  %v535_v16 = vmul.f32 %v1741_v35, %v2063_v40 }
 0x866   :  { %524 = vrot.lane.b32.xlu0 %v522_v37, %s1826_s5 }
 0x86a   :  { %540 = vrot.lane.b32.xlu0 %v2083_v18, %s1828_s18 }
 0x8d8   :  { %v525_v38 = vpop.permute.xlu0 %524 }
 0x8d9   :  { %v527_v39 = vadd.f32 %v525_v38, %v506_v21 }
 0x8db   :  { %1742 = vtanh.f32 %v527_v39 }
 0x8dc   :  { %v541_v46 = vpop.permute.xlu0 %540 }
 0x8e5   :  { %v1743_v41 = vpop.eup %1742 }
 0x8e6   :  { %531 = vrot.lane.b32.xlu1 %v1743_v41, %s1828_s18 }
 0x958   :  { %v532_v43 = vpop.permute.xlu1 %531 }
 0x959   :  { %v534_v44 = vmul.f32 %v532_v43, %v529_v42 }
 0x95b   :  { %v2104_v45 = vadd.f32 %v535_v16, %v534_v44 }
 0x95d   :  { %v543_v47 = vsel %vm316_vm3, %v541_v46, %v2104_v45 }
 0x95e   :  { %v544_v50 = vpack.c.bf16 %v543_v47, %v543_v47 }
 0x960   :  { %1555 = vmatmul.mubr.msk.bf16.vlgmr.msra.gmra.mrb[16].mxu0 %vm221_vm1, %v544_v50 }
 0x961   :  { %1650 = vmatpush3.bf16.msra.mxu0 %v2009_v49  ;;  %1653 = vmatprep.mubr.msk.bf16.mxu0 %vm1829_vm2, %v1827_v48 }
 0x962   :  { %1651 = vmatprep.subr.bf16.mxu0 %v1827_v48 }
 0x965   :  { %1652 = vmatpush3.bf16.msra.mxu0 %v2020_v54 }
 0x966   :  { %850 = vmatprep.subr.bf16.mxu0 %v1894_v0 }
 0xa33   :  { %v582_v40 = vpop.f32.mrb[16].mxu0 }
 0xa34   :  { %v583_v51 = vadd.f32 %v582_v40, %v1985_v28  ;;  %v584_v52 = vpop.f32.mrb[17].mxu0 }
 0xa35   :  { %v586_v53 = vpop.f32.mrb[18].mxu0  ;;  %v585_v19 = vadd.f32 %v584_v52, %v1977_v22 }
 0xa36   :  { %v587_v55 = vpop.f32.mrb[19].mxu0  ;;  %597 = vrot.lane.b32.xlu1 %v583_v51, %s1826_s5  ;;  %v589_v57 = vadd.f32 %v583_v51, %v121_v56 }
 0xa38   :  { %v1556_v58 = vmul.f32 -1.442695, %v589_v57 }
 0xa3a   :  { %1744 = vpow2.f32 %v1556_v58 }
 0xa44   :  { %v1745_v59 = vpop.eup %1744 }
 0xa45   :  { %v593_v60 = vadd.f32 1.0, %v1745_v59 }
 0xa47   :  { %1746 = vrcp.f32 %v593_v60  ;;  %v124_v60 = vadd.f32 %v1981_v26, %v1992_v34 }
 0xa51   :  { %v1747_v62 = vpop.eup %1746 }
 0xa52   :  { %v607_v23 = vsub.f32 1.0, %v1747_v62  ;;  %v613_v61 = vmul.f32 %v1747_v62, %v2083_v18 }
 0xaa8   :  { %v598_v10 = vpop.permute.xlu1 %597 }
 0xaa9   :  { %v600_v27 = vmul.f32 %v1747_v62, %v598_v10 }
 0xaab   :  { %602 = vrot.lane.b32.xlu0 %v600_v27, %s1826_s5 }
 0xb1d   :  { %v603_v12 = vpop.permute.xlu0 %602 }
 0xb1e   :  { %v605_v14 = vadd.f32 %v603_v12, %v121_v56 }
 0xb20   :  { %1748 = vtanh.f32 %v605_v14 }
 0xb2a   :  { %v1749_v17 = vpop.eup %1748 }
 0xb2b   :  { %609 = vrot.lane.b32.xlu1 %v1749_v17, %s1828_s18 }
 0xb2f   :  { %670 = vrot.lane.b32.xlu1 %v585_v19, %s1826_s5 }
 0xb9d   :  { %v610_v20 = vpop.permute.xlu1 %609 }
 0xb9e   :  { %v612_v21 = vmul.f32 %v610_v20, %v607_v23 }
 0xba0   :  { %v2124_v24 = vadd.f32 %v613_v61, %v612_v21 }
 0xba1   :  { %v671_v41 = vpop.permute.xlu1 %670 }
 0xba2   :  { %v615_v25 = vpack.c.bf16 %v2124_v24, %v2124_v24 }
 0xba4   :  { %617 = vrot.lane.b32.xlu0 %v615_v25, %s1828_s18 }
 0xc16   :  { %v618_v29 = vpop.permute.xlu0 %617 }
 0xc17   :  { %1646 = vmatmul.mubr.msk.bf16.vlgmr.msra.gmra.mrb[8].mxu1 %vm316_vm3, %v618_v29 }
 0xc18   :  { %700 = vmatpush1.bf16.msra.mxu1 %v1900_v2  ;;  %731 = vmatprep.mubr.bf16.mxu1 %v1825_v1 }
 0xc19   :  { %701 = vmatprep.subr.bf16.mxu1 %v1906_v3 }
 0xc1c   :  { %702 = vmatpush1.bf16.msra.mxu1 %v1912_v4 }
 0xc1d   :  { %703 = vmatprep.subr.bf16.mxu1 %v1917_v5 }
 0xc20   :  { %704 = vmatpush1.bf16.msra.mxu1 %v1933_v9 }
 0xc21   :  { %705 = vmatprep.subr.bf16.mxu1 %v1945_v13 }
 0xc24   :  { %706 = vmatpush1.bf16.msra.mxu1 %v1953_v15 }
 0xc25   :  { %1657 = vmatprep.subr.bf16.mxu1 %v1827_v48 }
 0xcea   :  { %v656_v18 = vpop.f32.mrb[8].mxu1 }
 0xceb   :  { %v657_v30 = vadd.f32 %v2055_v11, %v656_v18  ;;  %v1647_v31 = vpop.f32.mrb[9].mxu1 }
 0xcec   :  { %v659_v32 = vpop.f32.mrb[10].mxu1 }
 0xced   :  { %v662_v33 = vadd.f32 %v657_v30, %v585_v19  ;;  %v1648_v35 = vpop.f32.mrb[11].mxu1 }
 0xcef   :  { %v1558_v36 = vmul.f32 -1.442695, %v662_v33 }
 0xcf1   :  { %1750 = vpow2.f32 %v1558_v36 }
 0xcfb   :  { %v1751_v37 = vpop.eup %1750 }
 0xcfc   :  { %v666_v38 = vadd.f32 1.0, %v1751_v37 }
 0xcfe   :  { %1752 = vrcp.f32 %v666_v38 }
 0xd08   :  { %v1753_v39 = vpop.eup %1752 }
 0xd09   :  { %v673_v42 = vmul.f32 %v1753_v39, %v671_v41  ;;  %v680_v46 = vsub.f32 1.0, %v1753_v39  ;;  %v686_v50 = vmul.f32 %v1753_v39, %v2104_v45 }
 0xd0b   :  { %675 = vrot.lane.b32.xlu0 %v673_v42, %s1826_s5 }
 0xd0f   :  { %691 = vrot.lane.b32.xlu0 %v2124_v24, %s1828_s18 }
 0xd7d   :  { %v676_v43 = vpop.permute.xlu0 %675 }
 0xd7e   :  { %v678_v16 = vadd.f32 %v676_v43, %v657_v30 }
 0xd80   :  { %1754 = vtanh.f32 %v678_v16 }
 0xd81   :  { %v692_v52 = vpop.permute.xlu0 %691 }
 0xd8a   :  { %v1755_v44 = vpop.eup %1754 }
 0xd8b   :  { %682 = vrot.lane.b32.xlu1 %v1755_v44, %s1828_s18 }
 0xdfd   :  { %v683_v47 = vpop.permute.xlu1 %682 }
 0xdfe   :  { %v685_v40 = vmul.f32 %v683_v47, %v680_v46 }
 0xe00   :  { %v2145_v51 = vadd.f32 %v686_v50, %v685_v40 }
 0xe02   :  { %v694_v53 = vsel %vm316_vm3, %v692_v52, %v2145_v51 }
 0xe03   :  { %v695_v55 = vpack.c.bf16 %v694_v53, %v694_v53 }
 0xe05   :  { %1559 = vmatmul.mubr.msk.bf16.vlgmr.msra.gmra.mrb[12].mxu1 %vm221_vm1, %v695_v55 }
 0xe06   :  { %1658 = vmatpush3.bf16.msra.mxu1 %v2009_v49  ;;  %1661 = vmatprep.mubr.msk.bf16.mxu1 %vm1829_vm2, %v1827_v48 }
 0xe07   :  { %1659 = vmatprep.subr.bf16.mxu1 %v1827_v48 }
 0xe0a   :  { %1660 = vmatpush3.bf16.msra.mxu1 %v2020_v54 }
 0xe0b   :  { %1001 = vmatprep.subr.bf16.mxu1 %v1894_v0 }
 0xed8   :  { %v733_v45 = vpop.f32.mrb[12].mxu1 }
 0xed9   :  { %v734_v56 = vadd.f32 %v733_v45, %v1985_v28  ;;  %v735_v57 = vpop.f32.mrb[13].mxu1 }
 0xeda   :  { %v737_v58 = vpop.f32.mrb[14].mxu1  ;;  %v736_v21 = vadd.f32 %v735_v57, %v1977_v22 }
 0xedb   :  { %v738_v59 = vpop.f32.mrb[15].mxu1  ;;  %748 = vrot.lane.b32.xlu1 %v734_v56, %s1826_s5  ;;  %v740_v62 = vadd.f32 %v734_v56, %v124_v60 }
 0xedd   :  { %v1560_v10 = vmul.f32 -1.442695, %v740_v62 }
 0xedf   :  { %1756 = vpow2.f32 %v1560_v10 }
 0xee9   :  { %v1757_v27 = vpop.eup %1756 }
 0xeea   :  { %v744_v12 = vadd.f32 1.0, %v1757_v27  ;;  %v129_v27 = vadd.f32 %v1992_v34, %v2039_v6 }
 0xeec   :  { %1758 = vrcp.f32 %v744_v12 }
 0xef6   :  { %v1759_v14 = vpop.eup %1758 }
 0xef7   :  { %v758_v26 = vsub.f32 1.0, %v1759_v14  ;;  %v764_v29 = vmul.f32 %v1759_v14, %v2124_v24 }
 0xf4d   :  { %v749_v17 = vpop.permute.xlu1 %748 }
 0xf4e   :  { %v751_v19 = vmul.f32 %v1759_v14, %v749_v17 }
 0xf50   :  { %753 = vrot.lane.b32.xlu0 %v751_v19, %s1826_s5 }
 0xfc2   :  { %v754_v23 = vpop.permute.xlu0 %753 }
 0xfc3   :  { %v756_v20 = vadd.f32 %v754_v23, %v124_v60 }
 0xfc5   :  { %1760 = vtanh.f32 %v756_v20 }
 0xfcf   :  { %v1761_v61 = vpop.eup %1760 }
 0xfd0   :  { %760 = vrot.lane.b32.xlu1 %v1761_v61, %s1828_s18 }
 0xfd4   :  { %821 = vrot.lane.b32.xlu1 %v736_v21, %s1826_s5 }
0x1042   :  { %v761_v25 = vpop.permute.xlu1 %760 }
0x1043   :  { %v763_v18 = vmul.f32 %v761_v25, %v758_v26 }
0x1045   :  { %v2165_v30 = vadd.f32 %v764_v29, %v763_v18 }
0x1046   :  { %v822_v16 = vpop.permute.xlu1 %821 }
0x1047   :  { %v766_v31 = vpack.c.bf16 %v2165_v30, %v2165_v30 }
0x1049   :  { %768 = vrot.lane.b32.xlu0 %v766_v31, %s1828_s18 }
0x10bb   :  { %v769_v32 = vpop.permute.xlu0 %768 }
0x10bc   :  { %1654 = vmatmul.mubr.msk.bf16.vlgmr.msra.gmra.mrb[20].mxu0 %vm316_vm3, %v769_v32 }
0x10bd   :  { %851 = vmatpush1.bf16.msra.mxu0 %v1900_v2  ;;  %882 = vmatprep.mubr.bf16.mxu0 %v1825_v1 }
0x10be   :  { %852 = vmatprep.subr.bf16.mxu0 %v1906_v3 }
0x10c1   :  { %853 = vmatpush1.bf16.msra.mxu0 %v1912_v4 }
0x10c2   :  { %854 = vmatprep.subr.bf16.mxu0 %v1917_v5 }
0x10c5   :  { %855 = vmatpush1.bf16.msra.mxu0 %v1933_v9 }
0x10c6   :  { %856 = vmatprep.subr.bf16.mxu0 %v1945_v13 }
0x10c9   :  { %857 = vmatpush1.bf16.msra.mxu0 %v1953_v15 }
0x10ca   :  { %1665 = vmatprep.subr.bf16.mxu0 %v1827_v48 }
0x118f   :  { %v807_v24 = vpop.f32.mrb[20].mxu0 }
0x1190   :  { %v808_v33 = vadd.f32 %v2055_v11, %v807_v24  ;;  %v1655_v35 = vpop.f32.mrb[21].mxu0 }
0x1191   :  { %v810_v36 = vpop.f32.mrb[22].mxu0 }
0x1192   :  { %v813_v37 = vadd.f32 %v808_v33, %v736_v21  ;;  %v1656_v38 = vpop.f32.mrb[23].mxu0 }
0x1194   :  { %v1562_v39 = vmul.f32 -1.442695, %v813_v37 }
0x1196   :  { %1762 = vpow2.f32 %v1562_v39 }
0x11a0   :  { %v1763_v41 = vpop.eup %1762 }
0x11a1   :  { %v817_v42 = vadd.f32 1.0, %v1763_v41 }
0x11a3   :  { %1764 = vrcp.f32 %v817_v42 }
0x11ad   :  { %v1765_v43 = vpop.eup %1764 }
0x11ae   :  { %v824_v44 = vmul.f32 %v1765_v43, %v822_v16  ;;  %v831_v40 = vsub.f32 1.0, %v1765_v43  ;;  %v837_v53 = vmul.f32 %v1765_v43, %v2145_v51 }
0x11b0   :  { %826 = vrot.lane.b32.xlu0 %v824_v44, %s1826_s5 }
0x11b4   :  { %842 = vrot.lane.b32.xlu0 %v2165_v30, %s1828_s18 }
0x1222   :  { %v827_v46 = vpop.permute.xlu0 %826 }
0x1223   :  { %v829_v47 = vadd.f32 %v827_v46, %v808_v33 }
0x1225   :  { %1766 = vtanh.f32 %v829_v47 }
0x1226   :  { %v843_v56 = vpop.permute.xlu0 %842 }
0x122f   :  { %v1767_v50 = vpop.eup %1766 }
0x1230   :  { %833 = vrot.lane.b32.xlu1 %v1767_v50, %s1828_s18 }
0x12a2   :  { %v834_v52 = vpop.permute.xlu1 %833 }
0x12a3   :  { %v836_v55 = vmul.f32 %v834_v52, %v831_v40 }
0x12a5   :  { %v2186_v45 = vadd.f32 %v837_v53, %v836_v55 }
0x12a7   :  { %v845_v57 = vsel %vm316_vm3, %v843_v56, %v2186_v45 }
0x12a8   :  { %v846_v58 = vpack.c.bf16 %v845_v57, %v845_v57 }
0x12aa   :  { %1563 = vmatmul.mubr.msk.bf16.vlgmr.msra.gmra.mrb[24].mxu0 %vm221_vm1, %v846_v58 }
0x12ab   :  { %1666 = vmatpush3.bf16.msra.mxu0 %v2009_v49  ;;  %1669 = vmatprep.mubr.msk.bf16.mxu0 %vm1829_vm2, %v1827_v48 }
0x12ac   :  { %1667 = vmatprep.subr.bf16.mxu0 %v1827_v48 }
0x12af   :  { %1668 = vmatpush3.bf16.msra.mxu0 %v2020_v54 }
0x12b0   :  { %1152 = vmatprep.subr.bf16.mxu0 %v1894_v0 }
0x137d   :  { %v884_v51 = vpop.f32.mrb[24].mxu0 }
0x137e   :  { %v885_v59 = vadd.f32 %v884_v51, %v1985_v28  ;;  %v886_v60 = vpop.f32.mrb[25].mxu0 }
0x137f   :  { %v888_v62 = vpop.f32.mrb[26].mxu0  ;;  %v887_v29 = vadd.f32 %v886_v60, %v1977_v22 }
0x1380   :  { %v889_v10 = vpop.f32.mrb[27].mxu0  ;;  %899 = vrot.lane.b32.xlu1 %v885_v59, %s1826_s5  ;;  %v891_v12 = vadd.f32 %v885_v59, %v129_v27 }
0x1382   :  { %v1564_v14 = vmul.f32 -1.442695, %v891_v12 }
0x1384   :  { %1768 = vpow2.f32 %v1564_v14 }
0x138e   :  { %v1769_v17 = vpop.eup %1768 }
0x138f   :  { %v895_v19 = vadd.f32 1.0, %v1769_v17 }
0x1391   :  { %1770 = vrcp.f32 %v895_v19 }
0x139b   :  { %v1771_v23 = vpop.eup %1770 }
0x139c   :  { %v909_v6 = vsub.f32 1.0, %v1771_v23  ;;  %v915_v31 = vmul.f32 %v1771_v23, %v2165_v30 }
0x13f2   :  { %v900_v20 = vpop.permute.xlu1 %899 }
0x13f3   :  { %v902_v61 = vmul.f32 %v1771_v23, %v900_v20 }
0x13f5   :  { %904 = vrot.lane.b32.xlu0 %v902_v61, %s1826_s5 }
0x1467   :  { %v905_v21 = vpop.permute.xlu0 %904 }
0x1468   :  { %v907_v26 = vadd.f32 %v905_v21, %v129_v27  ;;  %v132_v27 = vadd.f32 %v1992_v34, %v2043_v8 }
0x146a   :  { %1772 = vtanh.f32 %v907_v26 }
0x1474   :  { %v1773_v25 = vpop.eup %1772 }
0x1475   :  { %911 = vrot.lane.b32.xlu1 %v1773_v25, %s1828_s18 }
0x1479   :  { %972 = vrot.lane.b32.xlu1 %v887_v29, %s1826_s5 }
0x14e7   :  { %v912_v18 = vpop.permute.xlu1 %911 }
0x14e8   :  { %v914_v32 = vmul.f32 %v912_v18, %v909_v6 }
0x14ea   :  { %v2206_v24 = vadd.f32 %v915_v31, %v914_v32 }
0x14eb   :  { %v973_v16 = vpop.permute.xlu1 %972 }
0x14ec   :  { %v917_v33 = vpack.c.bf16 %v2206_v24, %v2206_v24 }
0x14ee   :  { %919 = vrot.lane.b32.xlu0 %v917_v33, %s1828_s18 }
0x1560   :  { %v920_v35 = vpop.permute.xlu0 %919 }
0x1561   :  { %1662 = vmatmul.mubr.msk.bf16.vlgmr.msra.gmra.mrb[16].mxu1 %vm316_vm3, %v920_v35  ;;  %v2256_v35 = vld [vmem:[%s2375_s4] ss:$8 sps:$4 sm:$0xff]  }
0x1562   :  { %1002 = vmatpush1.bf16.msra.mxu1 %v1900_v2  ;;  %1033 = vmatprep.mubr.bf16.mxu1 %v1825_v1 }
0x1563   :  { %1003 = vmatprep.subr.bf16.mxu1 %v1906_v3 }
0x1566   :  { %1004 = vmatpush1.bf16.msra.mxu1 %v1912_v4 }
0x1567   :  { %1005 = vmatprep.subr.bf16.mxu1 %v1917_v5 }
0x156a   :  { %1006 = vmatpush1.bf16.msra.mxu1 %v1933_v9 }
0x156b   :  { %1007 = vmatprep.subr.bf16.mxu1 %v1945_v13 }
0x156e   :  { %1008 = vmatpush1.bf16.msra.mxu1 %v1953_v15 }
0x156f   :  { %1673 = vmatprep.subr.bf16.mxu1 %v1827_v48 }
0x1634   :  { %v958_v30 = vpop.f32.mrb[16].mxu1 }
0x1635   :  { %v959_v36 = vadd.f32 %v2055_v11, %v958_v30  ;;  %v1663_v2 = vpop.f32.mrb[17].mxu1 }
0x1636   :  { %v961_v37 = vpop.f32.mrb[18].mxu1 }
0x1637   :  { %v964_v38 = vadd.f32 %v959_v36, %v887_v29  ;;  %v1664_v39 = vpop.f32.mrb[19].mxu1 }
0x1639   :  { %v1566_v3 = vmul.f32 -1.442695, %v964_v38 }
0x163b   :  { %1774 = vpow2.f32 %v1566_v3 }
0x1645   :  { %v1775_v41 = vpop.eup %1774 }
0x1646   :  { %v968_v42 = vadd.f32 1.0, %v1775_v41 }
0x1648   :  { %1776 = vrcp.f32 %v968_v42 }
0x1652   :  { %v1777_v43 = vpop.eup %1776 }
0x1653   :  { %v975_v44 = vmul.f32 %v1777_v43, %v973_v16  ;;  %v982_v40 = vsub.f32 1.0, %v1777_v43  ;;  %v988_v53 = vmul.f32 %v1777_v43, %v2186_v45 }
0x1655   :  { %977 = vrot.lane.b32.xlu0 %v975_v44, %s1826_s5 }
0x1659   :  { %993 = vrot.lane.b32.xlu0 %v2206_v24, %s1828_s18 }
0x16c7   :  { %v978_v46 = vpop.permute.xlu0 %977 }
0x16c8   :  { %v980_v47 = vadd.f32 %v978_v46, %v959_v36 }
0x16ca   :  { %1778 = vtanh.f32 %v980_v47 }
0x16cb   :  { %v994_v57 = vpop.permute.xlu0 %993 }
0x16d4   :  { %v1779_v50 = vpop.eup %1778 }
0x16d5   :  { %984 = vrot.lane.b32.xlu1 %v1779_v50, %s1828_s18 }
0x1747   :  { %v985_v52 = vpop.permute.xlu1 %984 }
0x1748   :  { %v987_v55 = vmul.f32 %v985_v52, %v982_v40 }
0x174a   :  { %v2227_v56 = vadd.f32 %v988_v53, %v987_v55 }
0x174c   :  { %v996_v58 = vsel %vm316_vm3, %v994_v57, %v2227_v56 }
0x174d   :  { %v997_v51 = vpack.c.bf16 %v996_v58, %v996_v58 }
0x174f   :  { %1567 = vmatmul.mubr.msk.bf16.vlgmr.msra.gmra.mrb[20].mxu1 %vm221_vm1, %v997_v51 }
0x1750   :  { %1674 = vmatpush3.bf16.msra.mxu1 %v2009_v49  ;;  %1677 = vmatprep.mubr.msk.bf16.mxu1 %vm1829_vm2, %v1827_v48 }
0x1751   :  { %1675 = vmatprep.subr.bf16.mxu1 %v1827_v48 }
0x1754   :  { %1676 = vmatpush3.bf16.msra.mxu1 %v2020_v54 }
0x1755   :  { %1303 = vmatprep.subr.bf16.mxu1 %v1894_v0 }
0x1822   :  { %v1035_v45 = vpop.f32.mrb[20].mxu1 }
0x1823   :  { %v1036_v59 = vadd.f32 %v1035_v45, %v1985_v28  ;;  %v1037_v60 = vpop.f32.mrb[21].mxu1 }
0x1824   :  { %v1039_v62 = vpop.f32.mrb[22].mxu1  ;;  %v1038_v25 = vadd.f32 %v1037_v60, %v1977_v22 }
0x1825   :  { %v1040_v10 = vpop.f32.mrb[23].mxu1  ;;  %1050 = vrot.lane.b32.xlu1 %v1036_v59, %s1826_s5  ;;  %v1042_v12 = vadd.f32 %v1036_v59, %v132_v27 }
0x1827   :  { %v1568_v14 = vmul.f32 -1.442695, %v1042_v12 }
0x1829   :  { %1780 = vpow2.f32 %v1568_v14 }
0x1833   :  { %v1781_v17 = vpop.eup %1780 }
0x1834   :  { %v1046_v19 = vadd.f32 1.0, %v1781_v17 }
0x1836   :  { %1782 = vrcp.f32 %v1046_v19 }
0x1840   :  { %v1783_v23 = vpop.eup %1782 }
0x1841   :  { %v1060_v8 = vsub.f32 1.0, %v1783_v23  ;;  %v1066_v6 = vmul.f32 %v1783_v23, %v2206_v24  ;;  %v2263_v24 = vld [vmem:[%s2375_s4 + $0x14] ss:$8 sps:$4 sm:$0xff]  }
0x1897   :  { %v1051_v20 = vpop.permute.xlu1 %1050 }
0x1898   :  { %v1053_v0 = vmul.f32 %v1783_v23, %v1051_v20 }
0x189a   :  { %1055 = vrot.lane.b32.xlu0 %v1053_v0, %s1826_s5 }
0x190c   :  { %v1056_v61 = vpop.permute.xlu0 %1055 }
0x190d   :  { %v1058_v21 = vadd.f32 %v1056_v61, %v132_v27 }
0x190f   :  { %1784 = vtanh.f32 %v1058_v21 }
0x1919   :  { %v1785_v26 = vpop.eup %1784 }
0x191a   :  { %1062 = vrot.lane.b32.xlu1 %v1785_v26, %s1828_s18  ;;  %v1818_v26 = vld [vmem:[%s2375_s4 + $0x10] ss:$8 sps:$4 sm:$0xff]  }
0x191e   :  { %1123 = vrot.lane.b32.xlu1 %v1038_v25, %s1826_s5 }
0x198c   :  { %v1063_v29 = vpop.permute.xlu1 %1062 }
0x198d   :  { %v1065_v18 = vmul.f32 %v1063_v29, %v1060_v8  ;;  %v1820_v8 = vld [vmem:[%s2375_s4 + $0x20] ss:$8 sps:$4 sm:$0xff]   ;;  %v1822_v29 = vld [vmem:[%s2375_s4 + $0x30] ss:$8 sps:$4 sm:$0xff]  }
0x198f   :  { %v2247_v31 = vadd.f32 %v1066_v6, %v1065_v18 }
0x1991   :  { %v1068_v32 = vpack.c.bf16 %v2247_v31, %v2247_v31 }
0x1993   :  { %1070 = vrot.lane.b32.xlu0 %v1068_v32, %s1828_s18 }
0x1a05   :  { %v1071_v33 = vpop.permute.xlu0 %1070 }
0x1a06   :  { %1670 = vmatmul.mubr.msk.bf16.vlgmr.msra.gmra.mrb[28].mxu0 %vm316_vm3, %v1071_v33 }
0x1a07   :  { %1153 = vmatpush1.bf16.msra.mxu0 %v2256_v35  ;;  %1184 = vmatprep.mubr.bf16.mxu0 %v1825_v1 }
0x1a08   :  { %1154 = vmatprep.subr.bf16.mxu0 %v2263_v24 }
0x1a0b   :  { %1155 = vmatpush1.bf16.msra.mxu0 %v1912_v4 }
0x1a0c   :  { %1156 = vmatprep.subr.bf16.mxu0 %v1917_v5 }
0x1a0f   :  { %1157 = vmatpush1.bf16.msra.mxu0 %v1933_v9  ;;  %v1124_v9 = vpop.permute.xlu1 %1123 }
0x1a10   :  { %1158 = vmatprep.subr.bf16.mxu0 %v1945_v13 }
0x1a13   :  { %1159 = vmatpush1.bf16.msra.mxu0 %v1953_v15 }
0x1a14   :  { %1681 = vmatprep.subr.bf16.mxu0 %v1827_v48 }
0x1ad9   :  { %v1109_v30 = vpop.f32.mrb[28].mxu0 }
0x1ada   :  { %v1110_v36 = vadd.f32 %v2055_v11, %v1109_v30  ;;  %v1671_v2 = vpop.f32.mrb[29].mxu0 }
0x1adb   :  { %v1112_v37 = vpop.f32.mrb[30].mxu0 }
0x1adc   :  { %v1115_v38 = vadd.f32 %v1110_v36, %v1038_v25  ;;  %v1672_v39 = vpop.f32.mrb[31].mxu0  ;;  %v1819_v25 = vld [vmem:[%s2375_s4 + $0x24] ss:$8 sps:$4 sm:$0xff]  }
0x1ade   :  { %v1570_v3 = vmul.f32 -1.442695, %v1115_v38 }
0x1ae0   :  { %1786 = vpow2.f32 %v1570_v3 }
0x1aea   :  { %v1787_v4 = vpop.eup %1786 }
0x1aeb   :  { %v1119_v41 = vadd.f32 1.0, %v1787_v4 }
0x1aed   :  { %1788 = vrcp.f32 %v1119_v41 }
0x1af7   :  { %v1789_v5 = vpop.eup %1788 }
0x1af8   :  { %v1126_v42 = vmul.f32 %v1789_v5, %v1124_v9  ;;  %v1133_v16 = vsub.f32 1.0, %v1789_v5  ;;  %v1139_v46 = vmul.f32 %v1789_v5, %v2227_v56 }
0x1afa   :  { %1128 = vrot.lane.b32.xlu0 %v1126_v42, %s1826_s5 }
0x1afe   :  { %1144 = vrot.lane.b32.xlu0 %v2247_v31, %s1828_s18 }
0x1b6c   :  { %v1129_v13 = vpop.permute.xlu0 %1128 }
0x1b6d   :  { %v1131_v15 = vadd.f32 %v1129_v13, %v1110_v36 }
0x1b6f   :  { %1790 = vtanh.f32 %v1131_v15 }
0x1b70   :  { %v1145_v40 = vpop.permute.xlu0 %1144 }
0x1b79   :  { %v1791_v43 = vpop.eup %1790 }
0x1b7a   :  { %1135 = vrot.lane.b32.xlu1 %v1791_v43, %s1828_s18 }
0x1bec   :  { %v1136_v44 = vpop.permute.xlu1 %1135 }
0x1bed   :  { %v1138_v47 = vmul.f32 %v1136_v44, %v1133_v16 }
0x1bef   :  { %v2278_v50 = vadd.f32 %v1139_v46, %v1138_v47 }
0x1bf1   :  { %v1147_v52 = vsel %vm316_vm3, %v1145_v40, %v2278_v50 }
0x1bf2   :  { %v1148_v53 = vpack.c.bf16 %v1147_v52, %v1147_v52 }
0x1bf4   :  { %1571 = vmatmul.mubr.msk.bf16.vlgmr.msra.gmra.mrb[32].mxu0 %vm221_vm1, %v1148_v53 }
0x1bf5   :  { %1682 = vmatpush3.bf16.msra.mxu0 %v2009_v49  ;;  %1685 = vmatprep.mubr.msk.bf16.mxu0 %vm1829_vm2, %v1827_v48  ;;  %v137_v49 = vadd.f32 %v2037_v63, %v1992_v34 }
0x1bf6   :  { %1683 = vmatprep.subr.bf16.mxu0 %v1827_v48 }
0x1bf9   :  { %1684 = vmatpush3.bf16.msra.mxu0 %v2020_v54 }
0x1bfa   :  { %1689 = vmatprep.subr.bf16.mxu0 %v1827_v48 }
0x1cc7   :  { %v1186_v55 = vpop.f32.mrb[32].mxu0 }
0x1cc8   :  { %v1187_v56 = vadd.f32 %v1186_v55, %v1985_v28  ;;  %v1188_v57 = vpop.f32.mrb[33].mxu0 }
0x1cc9   :  { %v1190_v58 = vpop.f32.mrb[34].mxu0  ;;  %v1189_v19 = vadd.f32 %v1188_v57, %v1977_v22 }
0x1cca   :  { %v1191_v51 = vpop.f32.mrb[35].mxu0  ;;  %1201 = vrot.lane.b32.xlu1 %v1187_v56, %s1826_s5  ;;  %v1193_v45 = vadd.f32 %v1187_v56, %v137_v49 }
0x1ccc   :  { %v1572_v59 = vmul.f32 -1.442695, %v1193_v45 }
0x1cce   :  { %1792 = vpow2.f32 %v1572_v59 }
0x1cd8   :  { %v1793_v60 = vpop.eup %1792 }
0x1cd9   :  { %v1197_v62 = vadd.f32 1.0, %v1793_v60 }
0x1cdb   :  { %1794 = vrcp.f32 %v1197_v62 }
0x1ce5   :  { %v1795_v54 = vpop.eup %1794 }
0x1ce6   :  { %v1211_v34 = vsub.f32 1.0, %v1795_v54  ;;  %v1217_v23 = vmul.f32 %v1795_v54, %v2247_v31 }
0x1d3c   :  { %v1202_v10 = vpop.permute.xlu1 %1201 }
0x1d3d   :  { %v1204_v27 = vmul.f32 %v1795_v54, %v1202_v10 }
0x1d3f   :  { %1206 = vrot.lane.b32.xlu0 %v1204_v27, %s1826_s5 }
0x1db1   :  { %v1207_v12 = vpop.permute.xlu0 %1206 }
0x1db2   :  { %v1209_v14 = vadd.f32 %v1207_v12, %v137_v49 }
0x1db4   :  { %1796 = vtanh.f32 %v1209_v14 }
0x1dbe   :  { %v1797_v17 = vpop.eup %1796 }
0x1dbf   :  { %1213 = vrot.lane.b32.xlu1 %v1797_v17, %s1828_s18 }
0x1dc3   :  { %1274 = vrot.lane.b32.xlu1 %v1189_v19, %s1826_s5 }
0x1e31   :  { %v1214_v63 = vpop.permute.xlu1 %1213 }
0x1e32   :  { %v1216_v20 = vmul.f32 %v1214_v63, %v1211_v34 }
0x1e34   :  { %v2298_v0 = vadd.f32 %v1217_v23, %v1216_v20 }
0x1e35   :  { %v1275_v37 = vpop.permute.xlu1 %1274 }
0x1e36   :  { %v1219_v61 = vpack.c.bf16 %v2298_v0, %v2298_v0 }
0x1e38   :  { %1221 = vrot.lane.b32.xlu0 %v1219_v61, %s1828_s18 }
0x1eaa   :  { %v1222_v21 = vpop.permute.xlu0 %1221 }
0x1eab   :  { %1678 = vmatmul.mubr.msk.bf16.vlgmr.msra.gmra.mrb[24].mxu1 %vm316_vm3, %v1222_v21 }
0x1eac   :  { %1304 = vmatpush1.bf16.msra.mxu1 %v2256_v35  ;;  %1335 = vmatprep.mubr.bf16.mxu1 %v1825_v1  ;;  %v1821_v1 = vld [vmem:[%s2375_s4 + $0x34] ss:$8 sps:$4 sm:$0xff]  }
0x1ead   :  { %1305 = vmatprep.subr.bf16.mxu1 %v2263_v24 }
0x1eb0   :  { %1306 = vmatpush1.bf16.msra.mxu1 %v1818_v26 }
0x1eb1   :  { %1307 = vmatprep.subr.bf16.mxu1 %v1819_v25 }
0x1eb4   :  { %1308 = vmatpush1.bf16.msra.mxu1 %v1820_v8 }
0x1eb5   :  { %1309 = vmatprep.subr.bf16.mxu1 %v1821_v1 }
0x1eb8   :  { %1310 = vmatpush1.bf16.msra.mxu1 %v1822_v29 }
0x1f7e   :  { %v1260_v6 = vpop.f32.mrb[24].mxu1 }
0x1f7f   :  { %v1261_v18 = vadd.f32 %v2055_v11, %v1260_v6  ;;  %v1679_v31 = vpop.f32.mrb[25].mxu1  ;;  %v1718_v6 = vld [vmem:[%s2383_s8] sm:$0xff]  }
0x1f80   :  { %v1263_v32 = vpop.f32.mrb[26].mxu1 }
0x1f81   :  { %v1266_v33 = vadd.f32 %v1261_v18, %v1189_v19  ;;  %v1680_v35 = vpop.f32.mrb[27].mxu1 }
0x1f83   :  { %v1574_v24 = vmul.f32 -1.442695, %v1266_v33 }
0x1f85   :  { %1798 = vpow2.f32 %v1574_v24 }
0x1f8f   :  { %v1799_v30 = vpop.eup %1798 }
0x1f90   :  { %v1270_v36 = vadd.f32 1.0, %v1799_v30 }
0x1f92   :  { %1800 = vrcp.f32 %v1270_v36 }
0x1f9c   :  { %v1801_v2 = vpop.eup %1800 }
0x1f9d   :  { %v1277_v38 = vmul.f32 %v1801_v2, %v1275_v37  ;;  %v1284_v4 = vsub.f32 1.0, %v1801_v2  ;;  %v1290_v5 = vmul.f32 %v1801_v2, %v2278_v50  ;;  %v1823_v50 = vld [vmem:[%s2380_s3] ss:$0 sm:$0xff] }
0x1f9e   :  { %v140_v52 = vadd.f32 %v1823_v50, %v2041_v7 }
0x1f9f   :  { %1279 = vrot.lane.b32.xlu0 %v1277_v38, %s1826_s5 }
0x1fa3   :  { %1295 = vrot.lane.b32.xlu0 %v2298_v0, %s1828_s18 }
0x2011   :  { %v1280_v39 = vpop.permute.xlu0 %1279 }
0x2012   :  { %v1282_v3 = vadd.f32 %v1280_v39, %v1261_v18  ;;  %v1719_v18 = vld [vmem:[%s2383_s8 + $0x8] sm:$0xff]  }
0x2014   :  { %1802 = vtanh.f32 %v1282_v3  ;;  %v1579_v3 = vld [vmem:[%s2385_s9] ss:$0 sm:$0xff] }
0x2015   :  { %v1296_v13 = vpop.permute.xlu0 %1295 }
0x201e   :  { %v1803_v11 = vpop.eup %1802 }
0x201f   :  { %1286 = vrot.lane.b32.xlu1 %v1803_v11, %s1828_s18 }
0x2091   :  { %v1287_v41 = vpop.permute.xlu1 %1286 }
0x2092   :  { %v1289_v9 = vmul.f32 %v1287_v41, %v1284_v4 }
0x2094   :  { %v2328_v42 = vadd.f32 %v1290_v5, %v1289_v9 }
0x2096   :  { %v1298_v15 = vsel %vm316_vm3, %v1296_v13, %v2328_v42 }
0x2097   :  { %v1299_v43 = vpack.c.bf16 %v1298_v15, %v1298_v15 }
0x2099   :  { %1575 = vmatmul.mubr.msk.bf16.vlgmr.msra.gmra.mrb[28].mxu1 %vm221_vm1, %v1299_v43 }
0x216c   :  { %v1337_v16 = vpop.f32.mrb[28].mxu1 }
0x216d   :  { %v1338_v44 = vadd.f32 %v1337_v16, %v1985_v28  ;;  %v1339_v46 = vpop.f32.mrb[29].mxu1 }
0x216e   :  { %v1341_v47 = vpop.f32.mrb[30].mxu1  ;;  %v1340_v60 = vadd.f32 %v1339_v46, %v1977_v22  ;;  %v1824_v22 = vld [vmem:[%s2382_s7] ss:$0 sm:$0xff] }
0x216f   :  { %v1342_v40 = vpop.f32.mrb[31].mxu1  ;;  %1352 = vrot.lane.b32.xlu1 %v1338_v44, %s1826_s5  ;;  %v1344_v53 = vadd.f32 %v1338_v44, %v140_v52 }
0x2171   :  { %v1576_v55 = vmul.f32 -1.442695, %v1344_v53 }
0x2173   :  { %1804 = vpow2.f32 %v1576_v55 }
0x217d   :  { %v1805_v56 = vpop.eup %1804 }
0x217e   :  { %v1348_v57 = vadd.f32 1.0, %v1805_v56 }
0x2180   :  { %1806 = vrcp.f32 %v1348_v57 }
0x218a   :  { %v1807_v58 = vpop.eup %1806 }
0x218b   :  { %v1362_v7 = vsub.f32 1.0, %v1807_v58  ;;  %v1368_v54 = vmul.f32 %v1807_v58, %v2298_v0 }
0x21e1   :  { %v1353_v51 = vpop.permute.xlu1 %1352 }
0x21e2   :  { %v1355_v28 = vmul.f32 %v1807_v58, %v1353_v51 }
0x21e4   :  { %1357 = vrot.lane.b32.xlu0 %v1355_v28, %s1826_s5 }
0x2256   :  { %v1358_v49 = vpop.permute.xlu0 %1357 }
0x2257   :  { %v1360_v45 = vadd.f32 %v1358_v49, %v140_v52 }
0x2259   :  { %1808 = vtanh.f32 %v1360_v45 }
0x2263   :  { %v1809_v59 = vpop.eup %1808 }
0x2264   :  { %1364 = vrot.lane.b32.xlu1 %v1809_v59, %s1828_s18 }
0x2268   :  { %1425 = vrot.lane.b32.xlu1 %v1340_v60, %s1826_s5 }
0x22d6   :  { %v1365_v62 = vpop.permute.xlu1 %1364 }
0x22d7   :  { %v1367_v10 = vmul.f32 %v1365_v62, %v1362_v7 }
0x22d9   :  { %v1369_v27 = vadd.f32 %v1368_v54, %v1367_v10 }
0x22da   :  { %v1426_v25 = vpop.permute.xlu1 %1425 }
0x22db   :  { %v1370_v12 = vpack.c.bf16 %v1369_v27, %v1369_v27 }
0x22dd   :  { %1372 = vrot.lane.b32.xlu0 %v1370_v12, %s1828_s18 }
0x234f   :  { %v1373_v14 = vpop.permute.xlu0 %1372 }
0x2350   :  { %1686 = vmatmul.mubr.msk.bf16.vlgmr.msra.gmra.mrb[36].mxu0 %vm316_vm3, %v1373_v14 }
0x2351   :  { %1693 = vmatprep.mubr.msk.bf16.mxu0 %vm1829_vm2, %v1827_v48  ;;  %1690 = vmatpush3.bf16.msra.mxu0 %v1718_v6 }
0x2352   :  { %1691 = vmatprep.subr.bf16.mxu0 %v1827_v48 }
0x2355   :  { %1692 = vmatpush3.bf16.msra.mxu0 %v1719_v18 }
0x2423   :  { %v1411_v17 = vpop.f32.mrb[36].mxu0 }
0x2424   :  { %v1412_v19 = vadd.f32 %v1824_v22, %v1411_v17  ;;  %v1687_v34 = vpop.f32.mrb[37].mxu0 }
0x2425   :  { %v1414_v63 = vpop.f32.mrb[38].mxu0 }
0x2426   :  { %v1417_v23 = vadd.f32 %v1412_v19, %v1340_v60  ;;  %v1688_v20 = vpop.f32.mrb[39].mxu0 }
0x2428   :  { %v1578_v0 = vmul.f32 -1.442695, %v1417_v23 }
0x242a   :  { %1810 = vpow2.f32 %v1578_v0 }
0x2434   :  { %v1811_v61 = vpop.eup %1810 }
0x2435   :  { %v1421_v21 = vadd.f32 1.0, %v1811_v61 }
0x2437   :  { %1812 = vrcp.f32 %v1421_v21 }
0x2441   :  { %v1813_v26 = vpop.eup %1812 }
0x2442   :  { %v1428_v8 = vmul.f32 %v1813_v26, %v1426_v25  ;;  %v1435_v32 = vsub.f32 1.0, %v1813_v26  ;;  %v1441_v35 = vmul.f32 %v1813_v26, %v2328_v42 }
0x2444   :  { %1430 = vrot.lane.b32.xlu0 %v1428_v8, %s1826_s5 }
0x24b6   :  { %v1431_v1 = vpop.permute.xlu0 %1430 }
0x24b7   :  { %v1433_v29 = vadd.f32 %v1431_v1, %v1412_v19 }
0x24b9   :  { %1814 = vtanh.f32 %v1433_v29 }
0x24c3   :  { %v1815_v31 = vpop.eup %1814 }
0x24c4   :  { %1437 = vrot.lane.b32.xlu1 %v1815_v31, %s1828_s18 }
0x24c8   :  { %1444 = vrot.lane.b32.xlu1 %v1369_v27, %s1828_s18 }
0x2536   :  { %v1438_v33 = vpop.permute.xlu1 %1437 }
0x2537   :  { %v1440_v24 = vmul.f32 %v1438_v33, %v1435_v32 }
0x2539   :  { %v1442_v30 = vadd.f32 %v1441_v35, %v1440_v24 }
0x253a   :  { %v1445_v36 = vpop.permute.xlu1 %1444 }
0x253b   :  { %v1447_v2 = vsel %vm316_vm3, %v1445_v36, %v1442_v30  ;;  %v1450_v37 = vmax.f32 %v1442_v30, 0.0 }
0x253c   :  { %v1448_v38 = vsel %vm221_vm1, %v1447_v2, 0.0 }
0x253d   :  { %1449 = vst [vmem:[%s2384_s11] sm:$0xff] %v1448_v38  ;;  %v1451_v48 = vpack.c.bf16 %v1450_v37, %v1450_v37 }
0x253f   :  { %1464 = vrot.lane.b32.xlu0 %v1451_v48, %s1828_s18 }
0x25b1   :  { %v1465_v39 = vpop.permute.xlu0 %1464 }
0x25b2   :  { %1694 = vmatmul.mubr.msk.bf16.vlgmr.msra.gmra.mrb[40].mxu0 %vm316_vm3, %v1465_v39 }
0x2685   :  { %v1515_v11 = vpop.f32.mrb[40].mxu0 }
0x2686   :  { %v1516_v4 = vadd.f32 %v1579_v3, %v1515_v11  ;;  %v1695_v41 = vpop.f32.mrb[41].mxu0 }
0x2687   :  { %v1518_v5 = vpop.f32.mrb[42].mxu0 }
0x2688   :  { %1521 = vst [vmem:[%s2386_s10] sm:$0xff] %v1516_v4  ;;  %v1696_v9 = vpop.f32.mrb[43].mxu0 }

</bundles_post_ra>
